<compile_context>
chip_gen: v7x
topology: tpu7x:2x2x1
jax: 0.10.0
libtpu: 0.0.40
codegen_flags: <defaults>
</compile_context>

<pallas_src>
import numpy as np
import jax
import jax.numpy as jnp
from jax import lax
from jax.experimental import pallas as pl
from jax.experimental.pallas import tpu as pltpu

NEG_SLOPE = 0.01   # torch.nn.LeakyReLU default
LN_EPS = 1e-5      # torch.nn.LayerNorm default

_LANES = 64        # every internal activation slab is (H, W*C) with W*C == 64
_K_PAD = 128       # stage-1 contraction dim, padded 96 -> 128
_HPAD = 40         # per-sample scratch slab height (>= 32+2, 8-aligned base)


def _lrelu(x):
    return jnp.where(x >= 0, x, NEG_SLOPE * x)


# ---------------------------------------------------------------------------
# Host-side (one-time) parameter re-layout.
# ---------------------------------------------------------------------------
def _make_w_row(w_oihw, w_in, stride, pad):
    """Folded tap matrix (k_h*W*Cin, OW*Cout) absorbing kw taps, W padding, stride.

    Row index = kh*(W*Cin) + w*Cin + ci  (matches the kernel's kh-major lane concat),
    col index = ow*Cout + co."""
    c_out, c_in, k_h, k_w = w_oihw.shape
    ow = (w_in + 2 * pad - k_w) // stride + 1
    m = np.zeros((k_h, w_in * c_in, ow * c_out), np.float32)
    wt = np.transpose(np.asarray(w_oihw, np.float32), (2, 3, 1, 0))  # (kh,kw,Cin,Cout)
    for kh in range(k_h):
        for o in range(ow):
            for kw in range(k_w):
                col = stride * o + kw - pad
                if 0 <= col < w_in:
                    m[kh, col * c_in:(col + 1) * c_in,
                          o * c_out:(o + 1) * c_out] = wt[kh, kw]
    return m.reshape(k_h * w_in * c_in, ow * c_out)


def _ln_row(p_chw):
    c, h, w = p_chw.shape
    return np.transpose(np.asarray(p_chw, np.float32), (1, 2, 0)).reshape(h, w * c)


def build_plan(params):
    """Pack every constant into ONE (R, 64) fp32 slab (single DMA) + static offsets."""
    conv = [tuple(np.asarray(t, np.float32) for t in p) for p in params["conv"]]
    ln = [tuple(np.asarray(t, np.float32) for t in p) for p in params["ln"]]

    pieces = []
    # stage 1: 1x1 conv, stride 1, pad 0; K padded 96 -> 128
    w1, b1 = conv[0]
    w1m = np.zeros((_K_PAD, _LANES), np.float32)
    w1m[:96] = _make_w_row(w1, 32, 1, 0)
    pieces += [("w1", w1m),
               ("b1", np.tile(b1, 32)[None, :]),            # tiled over OW
               ("g1", _ln_row(ln[0][0])), ("q1", _ln_row(ln[0][1]))]
    # stages 2-4: 4x4 conv, stride 2, pad 1; folded K = 4*W*Cin = 256 each
    for s, h_in in ((2, 32), (3, 16), (4, 8)):
        w, b = conv[s - 1]
        ow = h_in // 2
        pieces += [(f"w{s}", _make_w_row(w, h_in, 2, 1)),    # (256, 64)
                   (f"b{s}", np.tile(b, ow)[None, :]),       # tiled over OW (not OH)
                   (f"g{s}", _ln_row(ln[s - 1][0])),
                   (f"q{s}", _ln_row(ln[s - 1][1]))]
    # stage 5: 4x4 valid conv over the 4x4x16 map -> scalar
    w5, b5 = conv[4]
    pieces.append(("w5", np.transpose(w5[0], (1, 2, 0)).reshape(4, _LANES)))
    b5m = np.zeros((1, _LANES), np.float32)
    b5m[0, 0] = b5[0]
    pieces.append(("b5", b5m))

    offs, rows, cur = {}, [], 0
    for name, arr in pieces:
        r = arr.shape[0]
        rpad = -(-r // 8) * 8                                # 8-aligned row offsets
        buf = np.zeros((rpad, _LANES), np.float32)
        buf[:r] = arr
        offs[name] = (cur, r)
        rows.append(buf)
        cur += rpad
    return jnp.asarray(np.concatenate(rows, axis=0)), offs


# ---------------------------------------------------------------------------
# The fused Pallas kernel (TB samples per grid step).
# ---------------------------------------------------------------------------
def _make_kernel(offs, tb):
    def cget(c_ref, name):
        o, n = offs[name]
        return c_ref[o:o + n, :]

    def layernorm(y, g, q, h):
        """One-pass per-sample LayerNorm over sublane-stacked (tb*h, 64) slabs."""
        inv_n = 1.0 / (h * _LANES)
        out = []
        for b in range(tb):
            yb = y[b * h:(b + 1) * h]
            s1 = jnp.sum(yb, keepdims=True)                  # (1,1) -- independent
            s2 = jnp.sum(yb * yb, keepdims=True)             # (1,1) -- reductions
            m = s1 * inv_n
            v = jnp.maximum(s2 * inv_n - m * m, 0.0)
            out.append((yb - m) * lax.rsqrt(v + LN_EPS) * g + q)
        return jnp.concatenate(out, axis=0) if tb > 1 else out[0]

    def kernel(x_ref, c_ref, o_ref, pad_ref):
        zrow = jnp.zeros((1, _LANES), jnp.float32)

        # ---- stage 1: 1x1 conv == one (tb*32, 128) @ (128, 64) matmul ----
        a = jnp.dot(x_ref[...], cget(c_ref, "w1"),
                    preferred_element_type=jnp.float32)
        a = layernorm(_lrelu(a + cget(c_ref, "b1")),
                      cget(c_ref, "g1"), cget(c_ref, "q1"), 32)

        # ---- stages 2-4: 4x4 stride-2 conv as ONE K=256 matmul per stage ----
        for s, h in ((2, 32), (3, 16), (4, 8)):
            oh = h // 2
            rows = []
            for b in range(tb):
                base = b * _HPAD
                # Materialize the H-padded slab for this sample in VMEM scratch.
                pad_ref[base:base + 1, :] = zrow
                pad_ref[base + 1:base + 1 + h, :] = a[b * h:(b + 1) * h]
                pad_ref[base + 1 + h:base + 2 + h, :] = zrow
                # im2col along H via 4 sublane-strided loads, folded along lanes.
                taps = [pad_ref[pl.ds(base + kh, oh, stride=2), :]
                        for kh in range(4)]
                rows.append(jnp.concatenate(taps, axis=1))   # (oh, 256)
            r = jnp.concatenate(rows, axis=0) if tb > 1 else rows[0]
            y = jnp.dot(r, cget(c_ref, f"w{s}"),
                        preferred_element_type=jnp.float32)  # (tb*oh, 64)
            a = layernorm(_lrelu(y + cget(c_ref, f"b{s}")),
                          cget(c_ref, f"g{s}"), cget(c_ref, f"q{s}"), oh)

        # ---- stage 5: 4x4 valid conv -> scalar per sample (VPU mul + reduce) ----
        w5 = cget(c_ref, "w5")                               # (4, 64)
        b5 = cget(c_ref, "b5")[0:1, 0:1]                     # (1, 1)
        outs = []
        for b in range(tb):
            v = jnp.sum(a[b * 4:(b + 1) * 4] * w5, keepdims=True)
            outs.append(_lrelu(v + b5))
        o_ref[...] = jnp.concatenate(outs, axis=1) if tb > 1 else outs[0]

    return kernel


# ---------------------------------------------------------------------------
# pallas_call wrapper
# ---------------------------------------------------------------------------
def _pick_tb(batch):
    for tb in (8, 4, 2, 1):
        if batch % tb == 0:
            return tb
    return 1


def discriminator_forward(x_nchw, consts, offs):
    """x_nchw: (B, 3, 32, 32) float32  ->  (B, 1, 1, 1) float32."""
    B, C, H, W = x_nchw.shape
    assert (C, H, W) == (3, 32, 32)
    tb = _pick_tb(B)

    # NCHW -> row-flattened channels-last rows (B*32, 128): lane = w*3 + c, zero-padded
    # from 96 to 128 lanes (aligned K). Single tiny fused XLA op before the kernel.
    x_rows = jnp.transpose(x_nchw, (0, 2, 3, 1)).reshape(B, 32, 96)
    x_rows = jnp.pad(x_rows, ((0, 0), (0, 0), (0, _K_PAD - 96))).reshape(B * 32, _K_PAD)

    out = pl.pallas_call(
        _make_kernel(offs, tb),
        out_shape=jax.ShapeDtypeStruct((1, B), jnp.float32),
        grid=(B // tb,),
        in_specs=[
            pl.BlockSpec((tb * 32, _K_PAD), lambda i: (i, 0)),   # TB samples / step
            pl.BlockSpec(consts.shape, lambda i: (0, 0)),        # one packed const DMA
        ],
        out_specs=pl.BlockSpec((1, tb), lambda i: (0, i)),       # lane-dense output
        scratch_shapes=[pltpu.VMEM((tb * _HPAD, _LANES), jnp.float32)],
        compiler_params=pltpu.CompilerParams(
            dimension_semantics=("parallel",)),
    )(x_rows, consts)
    return out.reshape(B, 1, 1, 1)


# ---------------------------------------------------------------------------
# Parameters + plain-JAX reference (numerical check)
# ---------------------------------------------------------------------------
def init_params(key, depth=1):
    fp = 2 ** depth
    conv_shapes = [(fp, 3, 1, 1), (fp * 2, fp, 4, 4), (fp * 4, fp * 2, 4, 4),
                   (fp * 8, fp * 4, 4, 4), (1, fp * 8, 4, 4)]
    ln_shapes = [(fp, 32, 32), (fp * 2, 16, 16), (fp * 4, 8, 8), (fp * 8, 4, 4)]
    params = {"conv": [], "ln": []}
    keys = jax.random.split(key, 2 * len(conv_shapes))
    for i, shp in enumerate(conv_shapes):
        w = 0.1 * jax.random.normal(keys[2 * i], shp, dtype=jnp.float32)
        b = 0.01 * jax.random.normal(keys[2 * i + 1], (shp[0],), dtype=jnp.float32)
        params["conv"].append((w, b))
    for shp in ln_shapes:  # PyTorch LayerNorm init: gamma=1, beta=0
        params["ln"].append((jnp.ones(shp, jnp.float32), jnp.zeros(shp, jnp.float32)))
    return params


def _ref_forward(x, params):
    def conv(x, w, b, s, p):
        y = lax.conv_general_dilated(x, w, (s, s), [(p, p), (p, p)],
                                     dimension_numbers=("NCHW", "OIHW", "NCHW"),
                                     precision=lax.Precision.HIGHEST)
        return y + b.reshape(1, -1, 1, 1)

    def ln(x, g, q):
        m = x.mean(axis=(1, 2, 3), keepdims=True)
        v = ((x - m) ** 2).mean(axis=(1, 2, 3), keepdims=True)
        return (x - m) / jnp.sqrt(v + LN_EPS) * g[None] + q[None]

    cfgs = [(1, 0), (2, 1), (2, 1), (2, 1)]
    for i, (s, p) in enumerate(cfgs):
        w, b = params["conv"][i]
        g, q = params["ln"][i]
        x = ln(_lrelu(conv(x, w, b, s, p)), g, q)
    w, b = params["conv"][4]
    return _lrelu(conv(x, w, b, 1, 0))


if __name__ == "__main__":
    key = jax.random.PRNGKey(0)
    k_x, k_p = jax.random.split(key)
    x = jax.random.normal(k_x, (2, 3, 32, 32), dtype=jnp.float32)  # NCHW like torch
    params = init_params(k_p, depth=1)
    consts, offs = build_plan(params)

    fwd = jax.jit(lambda xx, cc: discriminator_forward(xx, cc, offs))
    out = jax.block_until_ready(fwd(x, consts))
    assert out.shape == (2, 1, 1, 1), out.shape
    assert out.dtype == jnp.float32

    ref = jax.block_until_ready(jax.jit(_ref_forward)(x, params))
    np.testing.assert_allclose(np.asarray(out), np.asarray(ref), rtol=1e-4, atol=1e-4)

    print("KERNEL_OK")
</pallas_src>

<mosaic_0001>
module attributes {stable_mosaic.version = 11 : i64} {
  func.func @kernel(%arg0: i32, %arg1: memref<64x128xf32, #tpu.memory_space<vmem>>, %arg2: memref<1072x64xf32, #tpu.memory_space<vmem>>, %arg3: memref<1x2xf32, #tpu.memory_space<vmem>>, %arg4: memref<80x64xf32, #tpu.memory_space<vmem>>) attributes {dimension_semantics = [#tpu.dimension_semantics<parallel>], iteration_bounds = array<i64: 1>, scalar_prefetch = 0 : i64, scratch_operands = 1 : i64, tpu.core_type = #tpu.core_type<tc>, window_params = [{transform_indices = @transform_0, window_bounds = array<i64: 64, 128>}, {pipeline_mode = #tpu.pipeline_mode<synchronous>, transform_indices = @transform_1, window_bounds = array<i64: 1072, 64>}, {transform_indices = @transform_2, window_bounds = array<i64: 1, 2>}]} {
    %cst = arith.constant 0.000000e+00 : f32
    %0 = vector.broadcast %cst : f32 to vector<1x64xf32>
    %c0 = arith.constant 0 : index
    %c0_0 = arith.constant 0 : index
    %1 = vector.load %arg1[%c0, %c0_0] : memref<64x128xf32, #tpu.memory_space<vmem>>, vector<64x128xf32>
    %c0_1 = arith.constant 0 : index
    %c0_2 = arith.constant 0 : index
    %2 = vector.load %arg2[%c0_1, %c0_2] : memref<1072x64xf32, #tpu.memory_space<vmem>>, vector<128x64xf32>
    %cst_3 = arith.constant dense<0.000000e+00> : vector<64x64xf32>
    %3 = tpu.matmul %1, %2, %cst_3 {dimension_numbers = #tpu.dot_dimension_numbers<[1], [0], [0], [1], [0, 0, 1, 1], [], []>} : vector<64x128xf32>, vector<128x64xf32>, vector<64x64xf32> -> vector<64x64xf32>
    %c128 = arith.constant 128 : index
    %c0_4 = arith.constant 0 : index
    %4 = vector.load %arg2[%c128, %c0_4] : memref<1072x64xf32, #tpu.memory_space<vmem>>, vector<1x64xf32>
    %5 = vector.broadcast %4 : vector<1x64xf32> to vector<64x64xf32>
    %6 = arith.addf %3, %5 : vector<64x64xf32>
    %cst_5 = arith.constant 0.000000e+00 : f32
    %7 = vector.broadcast %cst_5 : f32 to vector<64x64xf32>
    %8 = arith.cmpf oge, %6, %7 : vector<64x64xf32>
    %cst_6 = arith.constant 0.00999999977 : f32
    %9 = vector.broadcast %cst_6 : f32 to vector<64x64xf32>
    %10 = arith.mulf %9, %6 : vector<64x64xf32>
    %11 = arith.select %8, %6, %10 : vector<64x64xi1>, vector<64x64xf32>
    %c136 = arith.constant 136 : index
    %c0_7 = arith.constant 0 : index
    %12 = vector.load %arg2[%c136, %c0_7] : memref<1072x64xf32, #tpu.memory_space<vmem>>, vector<32x64xf32>
    %c168 = arith.constant 168 : index
    %c0_8 = arith.constant 0 : index
    %13 = vector.load %arg2[%c168, %c0_8] : memref<1072x64xf32, #tpu.memory_space<vmem>>, vector<32x64xf32>
    %14 = vector.extract_strided_slice %11 {offsets = [0, 0], sizes = [32, 64], strides = [1, 1]} : vector<64x64xf32> to vector<32x64xf32>
    %15 = vector.shape_cast %14 : vector<32x64xf32> to vector<1x32x64xf32>
    %cst_9 = arith.constant dense<0.000000e+00> : vector<1xf32>
    %16 = vector.multi_reduction <add>, %15, %cst_9 [1, 2] : vector<1x32x64xf32> to vector<1xf32>
    %17 = vector.shape_cast %16 : vector<1xf32> to vector<1x1x1xf32>
    %18 = vector.extract %17[0, 0, 0] : f32 from vector<1x1x1xf32>
    %19 = vector.broadcast %18 : f32 to vector<1x1xf32>
    %20 = arith.mulf %14, %14 : vector<32x64xf32>
    %21 = vector.shape_cast %20 : vector<32x64xf32> to vector<1x32x64xf32>
    %cst_10 = arith.constant dense<0.000000e+00> : vector<1xf32>
    %22 = vector.multi_reduction <add>, %21, %cst_10 [1, 2] : vector<1x32x64xf32> to vector<1xf32>
    %23 = vector.shape_cast %22 : vector<1xf32> to vector<1x1x1xf32>
    %24 = vector.extract %23[0, 0, 0] : f32 from vector<1x1x1xf32>
    %25 = vector.broadcast %24 : f32 to vector<1x1xf32>
    %cst_11 = arith.constant 4.8828125E-4 : f32
    %26 = vector.broadcast %cst_11 : f32 to vector<1x1xf32>
    %27 = arith.mulf %19, %26 : vector<1x1xf32>
    %cst_12 = arith.constant 4.8828125E-4 : f32
    %28 = vector.broadcast %cst_12 : f32 to vector<1x1xf32>
    %29 = arith.mulf %25, %28 : vector<1x1xf32>
    %30 = arith.mulf %27, %27 : vector<1x1xf32>
    %31 = arith.subf %29, %30 : vector<1x1xf32>
    %cst_13 = arith.constant 0.000000e+00 : f32
    %32 = vector.broadcast %cst_13 : f32 to vector<1x1xf32>
    %33 = arith.maximumf %31, %32 : vector<1x1xf32>
    %34 = vector.broadcast %27 : vector<1x1xf32> to vector<32x64xf32>
    %35 = arith.subf %14, %34 : vector<32x64xf32>
    %cst_14 = arith.constant 9.99999974E-6 : f32
    %36 = vector.broadcast %cst_14 : f32 to vector<1x1xf32>
    %37 = arith.addf %33, %36 : vector<1x1xf32>
    %38 = math.rsqrt %37 : vector<1x1xf32>
    %39 = vector.broadcast %38 : vector<1x1xf32> to vector<32x64xf32>
    %40 = arith.mulf %35, %39 : vector<32x64xf32>
    %41 = arith.mulf %40, %12 : vector<32x64xf32>
    %42 = arith.addf %41, %13 : vector<32x64xf32>
    %43 = vector.extract_strided_slice %11 {offsets = [32, 0], sizes = [32, 64], strides = [1, 1]} : vector<64x64xf32> to vector<32x64xf32>
    %44 = vector.shape_cast %43 : vector<32x64xf32> to vector<1x32x64xf32>
    %cst_15 = arith.constant dense<0.000000e+00> : vector<1xf32>
    %45 = vector.multi_reduction <add>, %44, %cst_15 [1, 2] : vector<1x32x64xf32> to vector<1xf32>
    %46 = vector.shape_cast %45 : vector<1xf32> to vector<1x1x1xf32>
    %47 = vector.extract %46[0, 0, 0] : f32 from vector<1x1x1xf32>
    %48 = vector.broadcast %47 : f32 to vector<1x1xf32>
    %49 = arith.mulf %43, %43 : vector<32x64xf32>
    %50 = vector.shape_cast %49 : vector<32x64xf32> to vector<1x32x64xf32>
    %cst_16 = arith.constant dense<0.000000e+00> : vector<1xf32>
    %51 = vector.multi_reduction <add>, %50, %cst_16 [1, 2] : vector<1x32x64xf32> to vector<1xf32>
    %52 = vector.shape_cast %51 : vector<1xf32> to vector<1x1x1xf32>
    %53 = vector.extract %52[0, 0, 0] : f32 from vector<1x1x1xf32>
    %54 = vector.broadcast %53 : f32 to vector<1x1xf32>
    %cst_17 = arith.constant 4.8828125E-4 : f32
    %55 = vector.broadcast %cst_17 : f32 to vector<1x1xf32>
    %56 = arith.mulf %48, %55 : vector<1x1xf32>
    %cst_18 = arith.constant 4.8828125E-4 : f32
    %57 = vector.broadcast %cst_18 : f32 to vector<1x1xf32>
    %58 = arith.mulf %54, %57 : vector<1x1xf32>
    %59 = arith.mulf %56, %56 : vector<1x1xf32>
    %60 = arith.subf %58, %59 : vector<1x1xf32>
    %cst_19 = arith.constant 0.000000e+00 : f32
    %61 = vector.broadcast %cst_19 : f32 to vector<1x1xf32>
    %62 = arith.maximumf %60, %61 : vector<1x1xf32>
    %63 = vector.broadcast %56 : vector<1x1xf32> to vector<32x64xf32>
    %64 = arith.subf %43, %63 : vector<32x64xf32>
    %cst_20 = arith.constant 9.99999974E-6 : f32
    %65 = vector.broadcast %cst_20 : f32 to vector<1x1xf32>
    %66 = arith.addf %62, %65 : vector<1x1xf32>
    %67 = math.rsqrt %66 : vector<1x1xf32>
    %68 = vector.broadcast %67 : vector<1x1xf32> to vector<32x64xf32>
    %69 = arith.mulf %64, %68 : vector<32x64xf32>
    %70 = arith.mulf %69, %12 : vector<32x64xf32>
    %71 = arith.addf %70, %13 : vector<32x64xf32>
    %72 = tpu.concatenate %42, %71 in 0 : vector<32x64xf32>, vector<32x64xf32> -> vector<64x64xf32>
    %c0_21 = arith.constant 0 : index
    %c0_22 = arith.constant 0 : index
    %73 = vector.load %arg4[%c0_21, %c0_22] : memref<80x64xf32, #tpu.memory_space<vmem>>, vector<1x64xf32>
    tpu.vector_store %arg4[%c0_21, %c0_22], %0 {strides = array<i32>} : memref<80x64xf32, #tpu.memory_space<vmem>>, vector<1x64xf32>,
    %74 = vector.extract_strided_slice %72 {offsets = [0, 0], sizes = [32, 64], strides = [1, 1]} : vector<64x64xf32> to vector<32x64xf32>
    %c1 = arith.constant 1 : index
    %c0_23 = arith.constant 0 : index
    %75 = vector.load %arg4[%c1, %c0_23] : memref<80x64xf32, #tpu.memory_space<vmem>>, vector<32x64xf32>
    tpu.vector_store %arg4[%c1, %c0_23], %74 {strides = array<i32>} : memref<80x64xf32, #tpu.memory_space<vmem>>, vector<32x64xf32>,
    %c33 = arith.constant 33 : index
    %c0_24 = arith.constant 0 : index
    %76 = vector.load %arg4[%c33, %c0_24] : memref<80x64xf32, #tpu.memory_space<vmem>>, vector<1x64xf32>
    tpu.vector_store %arg4[%c33, %c0_24], %0 {strides = array<i32>} : memref<80x64xf32, #tpu.memory_space<vmem>>, vector<1x64xf32>,
    %c0_25 = arith.constant 0 : index
    %c0_26 = arith.constant 0 : index
    %77 = tpu.strided_load %arg4[%c0_25, %c0_26] {strides = array<i32: 2, 1>} : memref<80x64xf32, #tpu.memory_space<vmem>>, vector<16x64xf32>
    %c1_27 = arith.constant 1 : index
    %c0_28 = arith.constant 0 : index
    %78 = tpu.strided_load %arg4[%c1_27, %c0_28] {strides = array<i32: 2, 1>} : memref<80x64xf32, #tpu.memory_space<vmem>>, vector<16x64xf32>
    %c2 = arith.constant 2 : index
    %c0_29 = arith.constant 0 : index
    %79 = tpu.strided_load %arg4[%c2, %c0_29] {strides = array<i32: 2, 1>} : memref<80x64xf32, #tpu.memory_space<vmem>>, vector<16x64xf32>
    %c3 = arith.constant 3 : index
    %c0_30 = arith.constant 0 : index
    %80 = tpu.strided_load %arg4[%c3, %c0_30] {strides = array<i32: 2, 1>} : memref<80x64xf32, #tpu.memory_space<vmem>>, vector<16x64xf32>
    %81 = tpu.concatenate %77, %78, %79, %80 in 1 : vector<16x64xf32>, vector<16x64xf32>, vector<16x64xf32>, vector<16x64xf32> -> vector<16x256xf32>
    %c40 = arith.constant 40 : index
    %c0_31 = arith.constant 0 : index
    %82 = vector.load %arg4[%c40, %c0_31] : memref<80x64xf32, #tpu.memory_space<vmem>>, vector<1x64xf32>
    tpu.vector_store %arg4[%c40, %c0_31], %0 {strides = array<i32>} : memref<80x64xf32, #tpu.memory_space<vmem>>, vector<1x64xf32>,
    %83 = vector.extract_strided_slice %72 {offsets = [32, 0], sizes = [32, 64], strides = [1, 1]} : vector<64x64xf32> to vector<32x64xf32>
    %c41 = arith.constant 41 : index
    %c0_32 = arith.constant 0 : index
    %84 = vector.load %arg4[%c41, %c0_32] : memref<80x64xf32, #tpu.memory_space<vmem>>, vector<32x64xf32>
    tpu.vector_store %arg4[%c41, %c0_32], %83 {strides = array<i32>} : memref<80x64xf32, #tpu.memory_space<vmem>>, vector<32x64xf32>,
    %c73 = arith.constant 73 : index
    %c0_33 = arith.constant 0 : index
    %85 = vector.load %arg4[%c73, %c0_33] : memref<80x64xf32, #tpu.memory_space<vmem>>, vector<1x64xf32>
    tpu.vector_store %arg4[%c73, %c0_33], %0 {strides = array<i32>} : memref<80x64xf32, #tpu.memory_space<vmem>>, vector<1x64xf32>,
    %c40_34 = arith.constant 40 : index
    %c0_35 = arith.constant 0 : index
    %86 = tpu.strided_load %arg4[%c40_34, %c0_35] {strides = array<i32: 2, 1>} : memref<80x64xf32, #tpu.memory_space<vmem>>, vector<16x64xf32>
    %c41_36 = arith.constant 41 : index
    %c0_37 = arith.constant 0 : index
    %87 = tpu.strided_load %arg4[%c41_36, %c0_37] {strides = array<i32: 2, 1>} : memref<80x64xf32, #tpu.memory_space<vmem>>, vector<16x64xf32>
    %c42 = arith.constant 42 : index
    %c0_38 = arith.constant 0 : index
    %88 = tpu.strided_load %arg4[%c42, %c0_38] {strides = array<i32: 2, 1>} : memref<80x64xf32, #tpu.memory_space<vmem>>, vector<16x64xf32>
    %c43 = arith.constant 43 : index
    %c0_39 = arith.constant 0 : index
    %89 = tpu.strided_load %arg4[%c43, %c0_39] {strides = array<i32: 2, 1>} : memref<80x64xf32, #tpu.memory_space<vmem>>, vector<16x64xf32>
    %90 = tpu.concatenate %86, %87, %88, %89 in 1 : vector<16x64xf32>, vector<16x64xf32>, vector<16x64xf32>, vector<16x64xf32> -> vector<16x256xf32>
    %91 = tpu.concatenate %81, %90 in 0 : vector<16x256xf32>, vector<16x256xf32> -> vector<32x256xf32>
    %c200 = arith.constant 200 : index
    %c0_40 = arith.constant 0 : index
    %92 = vector.load %arg2[%c200, %c0_40] : memref<1072x64xf32, #tpu.memory_space<vmem>>, vector<256x64xf32>
    %cst_41 = arith.constant dense<0.000000e+00> : vector<32x64xf32>
    %93 = tpu.matmul %91, %92, %cst_41 {dimension_numbers = #tpu.dot_dimension_numbers<[1], [0], [0], [1], [0, 0, 1, 1], [], []>} : vector<32x256xf32>, vector<256x64xf32>, vector<32x64xf32> -> vector<32x64xf32>
    %c456 = arith.constant 456 : index
    %c0_42 = arith.constant 0 : index
    %94 = vector.load %arg2[%c456, %c0_42] : memref<1072x64xf32, #tpu.memory_space<vmem>>, vector<1x64xf32>
    %95 = vector.broadcast %94 : vector<1x64xf32> to vector<32x64xf32>
    %96 = arith.addf %93, %95 : vector<32x64xf32>
    %cst_43 = arith.constant 0.000000e+00 : f32
    %97 = vector.broadcast %cst_43 : f32 to vector<32x64xf32>
    %98 = arith.cmpf oge, %96, %97 : vector<32x64xf32>
    %cst_44 = arith.constant 0.00999999977 : f32
    %99 = vector.broadcast %cst_44 : f32 to vector<32x64xf32>
    %100 = arith.mulf %99, %96 : vector<32x64xf32>
    %101 = arith.select %98, %96, %100 : vector<32x64xi1>, vector<32x64xf32>
    %c464 = arith.constant 464 : index
    %c0_45 = arith.constant 0 : index
    %102 = vector.load %arg2[%c464, %c0_45] : memref<1072x64xf32, #tpu.memory_space<vmem>>, vector<16x64xf32>
    %c480 = arith.constant 480 : index
    %c0_46 = arith.constant 0 : index
    %103 = vector.load %arg2[%c480, %c0_46] : memref<1072x64xf32, #tpu.memory_space<vmem>>, vector<16x64xf32>
    %104 = vector.extract_strided_slice %101 {offsets = [0, 0], sizes = [16, 64], strides = [1, 1]} : vector<32x64xf32> to vector<16x64xf32>
    %105 = vector.shape_cast %104 : vector<16x64xf32> to vector<1x16x64xf32>
    %cst_47 = arith.constant dense<0.000000e+00> : vector<1xf32>
    %106 = vector.multi_reduction <add>, %105, %cst_47 [1, 2] : vector<1x16x64xf32> to vector<1xf32>
    %107 = vector.shape_cast %106 : vector<1xf32> to vector<1x1x1xf32>
    %108 = vector.extract %107[0, 0, 0] : f32 from vector<1x1x1xf32>
    %109 = vector.broadcast %108 : f32 to vector<1x1xf32>
    %110 = arith.mulf %104, %104 : vector<16x64xf32>
    %111 = vector.shape_cast %110 : vector<16x64xf32> to vector<1x16x64xf32>
    %cst_48 = arith.constant dense<0.000000e+00> : vector<1xf32>
    %112 = vector.multi_reduction <add>, %111, %cst_48 [1, 2] : vector<1x16x64xf32> to vector<1xf32>
    %113 = vector.shape_cast %112 : vector<1xf32> to vector<1x1x1xf32>
    %114 = vector.extract %113[0, 0, 0] : f32 from vector<1x1x1xf32>
    %115 = vector.broadcast %114 : f32 to vector<1x1xf32>
    %cst_49 = arith.constant 9.765625E-4 : f32
    %116 = vector.broadcast %cst_49 : f32 to vector<1x1xf32>
    %117 = arith.mulf %109, %116 : vector<1x1xf32>
    %cst_50 = arith.constant 9.765625E-4 : f32
    %118 = vector.broadcast %cst_50 : f32 to vector<1x1xf32>
    %119 = arith.mulf %115, %118 : vector<1x1xf32>
    %120 = arith.mulf %117, %117 : vector<1x1xf32>
    %121 = arith.subf %119, %120 : vector<1x1xf32>
    %cst_51 = arith.constant 0.000000e+00 : f32
    %122 = vector.broadcast %cst_51 : f32 to vector<1x1xf32>
    %123 = arith.maximumf %121, %122 : vector<1x1xf32>
    %124 = vector.broadcast %117 : vector<1x1xf32> to vector<16x64xf32>
    %125 = arith.subf %104, %124 : vector<16x64xf32>
    %cst_52 = arith.constant 9.99999974E-6 : f32
    %126 = vector.broadcast %cst_52 : f32 to vector<1x1xf32>
    %127 = arith.addf %123, %126 : vector<1x1xf32>
    %128 = math.rsqrt %127 : vector<1x1xf32>
    %129 = vector.broadcast %128 : vector<1x1xf32> to vector<16x64xf32>
    %130 = arith.mulf %125, %129 : vector<16x64xf32>
    %131 = arith.mulf %130, %102 : vector<16x64xf32>
    %132 = arith.addf %131, %103 : vector<16x64xf32>
    %133 = vector.extract_strided_slice %101 {offsets = [16, 0], sizes = [16, 64], strides = [1, 1]} : vector<32x64xf32> to vector<16x64xf32>
    %134 = vector.shape_cast %133 : vector<16x64xf32> to vector<1x16x64xf32>
    %cst_53 = arith.constant dense<0.000000e+00> : vector<1xf32>
    %135 = vector.multi_reduction <add>, %134, %cst_53 [1, 2] : vector<1x16x64xf32> to vector<1xf32>
    %136 = vector.shape_cast %135 : vector<1xf32> to vector<1x1x1xf32>
    %137 = vector.extract %136[0, 0, 0] : f32 from vector<1x1x1xf32>
    %138 = vector.broadcast %137 : f32 to vector<1x1xf32>
    %139 = arith.mulf %133, %133 : vector<16x64xf32>
    %140 = vector.shape_cast %139 : vector<16x64xf32> to vector<1x16x64xf32>
    %cst_54 = arith.constant dense<0.000000e+00> : vector<1xf32>
    %141 = vector.multi_reduction <add>, %140, %cst_54 [1, 2] : vector<1x16x64xf32> to vector<1xf32>
    %142 = vector.shape_cast %141 : vector<1xf32> to vector<1x1x1xf32>
    %143 = vector.extract %142[0, 0, 0] : f32 from vector<1x1x1xf32>
    %144 = vector.broadcast %143 : f32 to vector<1x1xf32>
    %cst_55 = arith.constant 9.765625E-4 : f32
    %145 = vector.broadcast %cst_55 : f32 to vector<1x1xf32>
    %146 = arith.mulf %138, %145 : vector<1x1xf32>
    %cst_56 = arith.constant 9.765625E-4 : f32
    %147 = vector.broadcast %cst_56 : f32 to vector<1x1xf32>
    %148 = arith.mulf %144, %147 : vector<1x1xf32>
    %149 = arith.mulf %146, %146 : vector<1x1xf32>
    %150 = arith.subf %148, %149 : vector<1x1xf32>
    %cst_57 = arith.constant 0.000000e+00 : f32
    %151 = vector.broadcast %cst_57 : f32 to vector<1x1xf32>
    %152 = arith.maximumf %150, %151 : vector<1x1xf32>
    %153 = vector.broadcast %146 : vector<1x1xf32> to vector<16x64xf32>
    %154 = arith.subf %133, %153 : vector<16x64xf32>
    %cst_58 = arith.constant 9.99999974E-6 : f32
    %155 = vector.broadcast %cst_58 : f32 to vector<1x1xf32>
    %156 = arith.addf %152, %155 : vector<1x1xf32>
    %157 = math.rsqrt %156 : vector<1x1xf32>
    %158 = vector.broadcast %157 : vector<1x1xf32> to vector<16x64xf32>
    %159 = arith.mulf %154, %158 : vector<16x64xf32>
    %160 = arith.mulf %159, %102 : vector<16x64xf32>
    %161 = arith.addf %160, %103 : vector<16x64xf32>
    %162 = tpu.concatenate %132, %161 in 0 : vector<16x64xf32>, vector<16x64xf32> -> vector<32x64xf32>
    %c0_59 = arith.constant 0 : index
    %c0_60 = arith.constant 0 : index
    %163 = vector.load %arg4[%c0_59, %c0_60] : memref<80x64xf32, #tpu.memory_space<vmem>>, vector<1x64xf32>
    tpu.vector_store %arg4[%c0_59, %c0_60], %0 {strides = array<i32>} : memref<80x64xf32, #tpu.memory_space<vmem>>, vector<1x64xf32>,
    %164 = vector.extract_strided_slice %162 {offsets = [0, 0], sizes = [16, 64], strides = [1, 1]} : vector<32x64xf32> to vector<16x64xf32>
    %c1_61 = arith.constant 1 : index
    %c0_62 = arith.constant 0 : index
    %165 = vector.load %arg4[%c1_61, %c0_62] : memref<80x64xf32, #tpu.memory_space<vmem>>, vector<16x64xf32>
    tpu.vector_store %arg4[%c1_61, %c0_62], %164 {strides = array<i32>} : memref<80x64xf32, #tpu.memory_space<vmem>>, vector<16x64xf32>,
    %c17 = arith.constant 17 : index
    %c0_63 = arith.constant 0 : index
    %166 = vector.load %arg4[%c17, %c0_63] : memref<80x64xf32, #tpu.memory_space<vmem>>, vector<1x64xf32>
    tpu.vector_store %arg4[%c17, %c0_63], %0 {strides = array<i32>} : memref<80x64xf32, #tpu.memory_space<vmem>>, vector<1x64xf32>,
    %c0_64 = arith.constant 0 : index
    %c0_65 = arith.constant 0 : index
    %167 = tpu.strided_load %arg4[%c0_64, %c0_65] {strides = array<i32: 2, 1>} : memref<80x64xf32, #tpu.memory_space<vmem>>, vector<8x64xf32>
    %c1_66 = arith.constant 1 : index
    %c0_67 = arith.constant 0 : index
    %168 = tpu.strided_load %arg4[%c1_66, %c0_67] {strides = array<i32: 2, 1>} : memref<80x64xf32, #tpu.memory_space<vmem>>, vector<8x64xf32>
    %c2_68 = arith.constant 2 : index
    %c0_69 = arith.constant 0 : index
    %169 = tpu.strided_load %arg4[%c2_68, %c0_69] {strides = array<i32: 2, 1>} : memref<80x64xf32, #tpu.memory_space<vmem>>, vector<8x64xf32>
    %c3_70 = arith.constant 3 : index
    %c0_71 = arith.constant 0 : index
    %170 = tpu.strided_load %arg4[%c3_70, %c0_71] {strides = array<i32: 2, 1>} : memref<80x64xf32, #tpu.memory_space<vmem>>, vector<8x64xf32>
    %171 = tpu.concatenate %167, %168, %169, %170 in 1 : vector<8x64xf32>, vector<8x64xf32>, vector<8x64xf32>, vector<8x64xf32> -> vector<8x256xf32>
    %c40_72 = arith.constant 40 : index
    %c0_73 = arith.constant 0 : index
    %172 = vector.load %arg4[%c40_72, %c0_73] : memref<80x64xf32, #tpu.memory_space<vmem>>, vector<1x64xf32>
    tpu.vector_store %arg4[%c40_72, %c0_73], %0 {strides = array<i32>} : memref<80x64xf32, #tpu.memory_space<vmem>>, vector<1x64xf32>,
    %173 = vector.extract_strided_slice %162 {offsets = [16, 0], sizes = [16, 64], strides = [1, 1]} : vector<32x64xf32> to vector<16x64xf32>
    %c41_74 = arith.constant 41 : index
    %c0_75 = arith.constant 0 : index
    %174 = vector.load %arg4[%c41_74, %c0_75] : memref<80x64xf32, #tpu.memory_space<vmem>>, vector<16x64xf32>
    tpu.vector_store %arg4[%c41_74, %c0_75], %173 {strides = array<i32>} : memref<80x64xf32, #tpu.memory_space<vmem>>, vector<16x64xf32>,
    %c57 = arith.constant 57 : index
    %c0_76 = arith.constant 0 : index
    %175 = vector.load %arg4[%c57, %c0_76] : memref<80x64xf32, #tpu.memory_space<vmem>>, vector<1x64xf32>
    tpu.vector_store %arg4[%c57, %c0_76], %0 {strides = array<i32>} : memref<80x64xf32, #tpu.memory_space<vmem>>, vector<1x64xf32>,
    %c40_77 = arith.constant 40 : index
    %c0_78 = arith.constant 0 : index
    %176 = tpu.strided_load %arg4[%c40_77, %c0_78] {strides = array<i32: 2, 1>} : memref<80x64xf32, #tpu.memory_space<vmem>>, vector<8x64xf32>
    %c41_79 = arith.constant 41 : index
    %c0_80 = arith.constant 0 : index
    %177 = tpu.strided_load %arg4[%c41_79, %c0_80] {strides = array<i32: 2, 1>} : memref<80x64xf32, #tpu.memory_space<vmem>>, vector<8x64xf32>
    %c42_81 = arith.constant 42 : index
    %c0_82 = arith.constant 0 : index
    %178 = tpu.strided_load %arg4[%c42_81, %c0_82] {strides = array<i32: 2, 1>} : memref<80x64xf32, #tpu.memory_space<vmem>>, vector<8x64xf32>
    %c43_83 = arith.constant 43 : index
    %c0_84 = arith.constant 0 : index
    %179 = tpu.strided_load %arg4[%c43_83, %c0_84] {strides = array<i32: 2, 1>} : memref<80x64xf32, #tpu.memory_space<vmem>>, vector<8x64xf32>
    %180 = tpu.concatenate %176, %177, %178, %179 in 1 : vector<8x64xf32>, vector<8x64xf32>, vector<8x64xf32>, vector<8x64xf32> -> vector<8x256xf32>
    %181 = tpu.concatenate %171, %180 in 0 : vector<8x256xf32>, vector<8x256xf32> -> vector<16x256xf32>
    %c496 = arith.constant 496 : index
    %c0_85 = arith.constant 0 : index
    %182 = vector.load %arg2[%c496, %c0_85] : memref<1072x64xf32, #tpu.memory_space<vmem>>, vector<256x64xf32>
    %cst_86 = arith.constant dense<0.000000e+00> : vector<16x64xf32>
    %183 = tpu.matmul %181, %182, %cst_86 {dimension_numbers = #tpu.dot_dimension_numbers<[1], [0], [0], [1], [0, 0, 1, 1], [], []>} : vector<16x256xf32>, vector<256x64xf32>, vector<16x64xf32> -> vector<16x64xf32>
    %c752 = arith.constant 752 : index
    %c0_87 = arith.constant 0 : index
    %184 = vector.load %arg2[%c752, %c0_87] : memref<1072x64xf32, #tpu.memory_space<vmem>>, vector<1x64xf32>
    %185 = vector.broadcast %184 : vector<1x64xf32> to vector<16x64xf32>
    %186 = arith.addf %183, %185 : vector<16x64xf32>
    %cst_88 = arith.constant 0.000000e+00 : f32
    %187 = vector.broadcast %cst_88 : f32 to vector<16x64xf32>
    %188 = arith.cmpf oge, %186, %187 : vector<16x64xf32>
    %cst_89 = arith.constant 0.00999999977 : f32
    %189 = vector.broadcast %cst_89 : f32 to vector<16x64xf32>
    %190 = arith.mulf %189, %186 : vector<16x64xf32>
    %191 = arith.select %188, %186, %190 : vector<16x64xi1>, vector<16x64xf32>
    %c760 = arith.constant 760 : index
    %c0_90 = arith.constant 0 : index
    %192 = vector.load %arg2[%c760, %c0_90] : memref<1072x64xf32, #tpu.memory_space<vmem>>, vector<8x64xf32>
    %c768 = arith.constant 768 : index
    %c0_91 = arith.constant 0 : index
    %193 = vector.load %arg2[%c768, %c0_91] : memref<1072x64xf32, #tpu.memory_space<vmem>>, vector<8x64xf32>
    %194 = vector.extract_strided_slice %191 {offsets = [0, 0], sizes = [8, 64], strides = [1, 1]} : vector<16x64xf32> to vector<8x64xf32>
    %195 = vector.shape_cast %194 : vector<8x64xf32> to vector<1x8x64xf32>
    %cst_92 = arith.constant dense<0.000000e+00> : vector<1xf32>
    %196 = vector.multi_reduction <add>, %195, %cst_92 [1, 2] : vector<1x8x64xf32> to vector<1xf32>
    %197 = vector.shape_cast %196 : vector<1xf32> to vector<1x1x1xf32>
    %198 = vector.extract %197[0, 0, 0] : f32 from vector<1x1x1xf32>
    %199 = vector.broadcast %198 : f32 to vector<1x1xf32>
    %200 = arith.mulf %194, %194 : vector<8x64xf32>
    %201 = vector.shape_cast %200 : vector<8x64xf32> to vector<1x8x64xf32>
    %cst_93 = arith.constant dense<0.000000e+00> : vector<1xf32>
    %202 = vector.multi_reduction <add>, %201, %cst_93 [1, 2] : vector<1x8x64xf32> to vector<1xf32>
    %203 = vector.shape_cast %202 : vector<1xf32> to vector<1x1x1xf32>
    %204 = vector.extract %203[0, 0, 0] : f32 from vector<1x1x1xf32>
    %205 = vector.broadcast %204 : f32 to vector<1x1xf32>
    %cst_94 = arith.constant 0.001953125 : f32
    %206 = vector.broadcast %cst_94 : f32 to vector<1x1xf32>
    %207 = arith.mulf %199, %206 : vector<1x1xf32>
    %cst_95 = arith.constant 0.001953125 : f32
    %208 = vector.broadcast %cst_95 : f32 to vector<1x1xf32>
    %209 = arith.mulf %205, %208 : vector<1x1xf32>
    %210 = arith.mulf %207, %207 : vector<1x1xf32>
    %211 = arith.subf %209, %210 : vector<1x1xf32>
    %cst_96 = arith.constant 0.000000e+00 : f32
    %212 = vector.broadcast %cst_96 : f32 to vector<1x1xf32>
    %213 = arith.maximumf %211, %212 : vector<1x1xf32>
    %214 = vector.broadcast %207 : vector<1x1xf32> to vector<8x64xf32>
    %215 = arith.subf %194, %214 : vector<8x64xf32>
    %cst_97 = arith.constant 9.99999974E-6 : f32
    %216 = vector.broadcast %cst_97 : f32 to vector<1x1xf32>
    %217 = arith.addf %213, %216 : vector<1x1xf32>
    %218 = math.rsqrt %217 : vector<1x1xf32>
    %219 = vector.broadcast %218 : vector<1x1xf32> to vector<8x64xf32>
    %220 = arith.mulf %215, %219 : vector<8x64xf32>
    %221 = arith.mulf %220, %192 : vector<8x64xf32>
    %222 = arith.addf %221, %193 : vector<8x64xf32>
    %223 = vector.extract_strided_slice %191 {offsets = [8, 0], sizes = [8, 64], strides = [1, 1]} : vector<16x64xf32> to vector<8x64xf32>
    %224 = vector.shape_cast %223 : vector<8x64xf32> to vector<1x8x64xf32>
    %cst_98 = arith.constant dense<0.000000e+00> : vector<1xf32>
    %225 = vector.multi_reduction <add>, %224, %cst_98 [1, 2] : vector<1x8x64xf32> to vector<1xf32>
    %226 = vector.shape_cast %225 : vector<1xf32> to vector<1x1x1xf32>
    %227 = vector.extract %226[0, 0, 0] : f32 from vector<1x1x1xf32>
    %228 = vector.broadcast %227 : f32 to vector<1x1xf32>
    %229 = arith.mulf %223, %223 : vector<8x64xf32>
    %230 = vector.shape_cast %229 : vector<8x64xf32> to vector<1x8x64xf32>
    %cst_99 = arith.constant dense<0.000000e+00> : vector<1xf32>
    %231 = vector.multi_reduction <add>, %230, %cst_99 [1, 2] : vector<1x8x64xf32> to vector<1xf32>
    %232 = vector.shape_cast %231 : vector<1xf32> to vector<1x1x1xf32>
    %233 = vector.extract %232[0, 0, 0] : f32 from vector<1x1x1xf32>
    %234 = vector.broadcast %233 : f32 to vector<1x1xf32>
    %cst_100 = arith.constant 0.001953125 : f32
    %235 = vector.broadcast %cst_100 : f32 to vector<1x1xf32>
    %236 = arith.mulf %228, %235 : vector<1x1xf32>
    %cst_101 = arith.constant 0.001953125 : f32
    %237 = vector.broadcast %cst_101 : f32 to vector<1x1xf32>
    %238 = arith.mulf %234, %237 : vector<1x1xf32>
    %239 = arith.mulf %236, %236 : vector<1x1xf32>
    %240 = arith.subf %238, %239 : vector<1x1xf32>
    %cst_102 = arith.constant 0.000000e+00 : f32
    %241 = vector.broadcast %cst_102 : f32 to vector<1x1xf32>
    %242 = arith.maximumf %240, %241 : vector<1x1xf32>
    %243 = vector.broadcast %236 : vector<1x1xf32> to vector<8x64xf32>
    %244 = arith.subf %223, %243 : vector<8x64xf32>
    %cst_103 = arith.constant 9.99999974E-6 : f32
    %245 = vector.broadcast %cst_103 : f32 to vector<1x1xf32>
    %246 = arith.addf %242, %245 : vector<1x1xf32>
    %247 = math.rsqrt %246 : vector<1x1xf32>
    %248 = vector.broadcast %247 : vector<1x1xf32> to vector<8x64xf32>
    %249 = arith.mulf %244, %248 : vector<8x64xf32>
    %250 = arith.mulf %249, %192 : vector<8x64xf32>
    %251 = arith.addf %250, %193 : vector<8x64xf32>
    %252 = tpu.concatenate %222, %251 in 0 : vector<8x64xf32>, vector<8x64xf32> -> vector<16x64xf32>
    %c0_104 = arith.constant 0 : index
    %c0_105 = arith.constant 0 : index
    %253 = vector.load %arg4[%c0_104, %c0_105] : memref<80x64xf32, #tpu.memory_space<vmem>>, vector<1x64xf32>
    tpu.vector_store %arg4[%c0_104, %c0_105], %0 {strides = array<i32>} : memref<80x64xf32, #tpu.memory_space<vmem>>, vector<1x64xf32>,
    %254 = vector.extract_strided_slice %252 {offsets = [0, 0], sizes = [8, 64], strides = [1, 1]} : vector<16x64xf32> to vector<8x64xf32>
    %c1_106 = arith.constant 1 : index
    %c0_107 = arith.constant 0 : index
    %255 = vector.load %arg4[%c1_106, %c0_107] : memref<80x64xf32, #tpu.memory_space<vmem>>, vector<8x64xf32>
    tpu.vector_store %arg4[%c1_106, %c0_107], %254 {strides = array<i32>} : memref<80x64xf32, #tpu.memory_space<vmem>>, vector<8x64xf32>,
    %c9 = arith.constant 9 : index
    %c0_108 = arith.constant 0 : index
    %256 = vector.load %arg4[%c9, %c0_108] : memref<80x64xf32, #tpu.memory_space<vmem>>, vector<1x64xf32>
    tpu.vector_store %arg4[%c9, %c0_108], %0 {strides = array<i32>} : memref<80x64xf32, #tpu.memory_space<vmem>>, vector<1x64xf32>,
    %c0_109 = arith.constant 0 : index
    %c0_110 = arith.constant 0 : index
    %257 = tpu.strided_load %arg4[%c0_109, %c0_110] {strides = array<i32: 2, 1>} : memref<80x64xf32, #tpu.memory_space<vmem>>, vector<4x64xf32>
    %c1_111 = arith.constant 1 : index
    %c0_112 = arith.constant 0 : index
    %258 = tpu.strided_load %arg4[%c1_111, %c0_112] {strides = array<i32: 2, 1>} : memref<80x64xf32, #tpu.memory_space<vmem>>, vector<4x64xf32>
    %c2_113 = arith.constant 2 : index
    %c0_114 = arith.constant 0 : index
    %259 = tpu.strided_load %arg4[%c2_113, %c0_114] {strides = array<i32: 2, 1>} : memref<80x64xf32, #tpu.memory_space<vmem>>, vector<4x64xf32>
    %c3_115 = arith.constant 3 : index
    %c0_116 = arith.constant 0 : index
    %260 = tpu.strided_load %arg4[%c3_115, %c0_116] {strides = array<i32: 2, 1>} : memref<80x64xf32, #tpu.memory_space<vmem>>, vector<4x64xf32>
    %261 = tpu.concatenate %257, %258, %259, %260 in 1 : vector<4x64xf32>, vector<4x64xf32>, vector<4x64xf32>, vector<4x64xf32> -> vector<4x256xf32>
    %c40_117 = arith.constant 40 : index
    %c0_118 = arith.constant 0 : index
    %262 = vector.load %arg4[%c40_117, %c0_118] : memref<80x64xf32, #tpu.memory_space<vmem>>, vector<1x64xf32>
    tpu.vector_store %arg4[%c40_117, %c0_118], %0 {strides = array<i32>} : memref<80x64xf32, #tpu.memory_space<vmem>>, vector<1x64xf32>,
    %263 = vector.extract_strided_slice %252 {offsets = [8, 0], sizes = [8, 64], strides = [1, 1]} : vector<16x64xf32> to vector<8x64xf32>
    %c41_119 = arith.constant 41 : index
    %c0_120 = arith.constant 0 : index
    %264 = vector.load %arg4[%c41_119, %c0_120] : memref<80x64xf32, #tpu.memory_space<vmem>>, vector<8x64xf32>
    tpu.vector_store %arg4[%c41_119, %c0_120], %263 {strides = array<i32>} : memref<80x64xf32, #tpu.memory_space<vmem>>, vector<8x64xf32>,
    %c49 = arith.constant 49 : index
    %c0_121 = arith.constant 0 : index
    %265 = vector.load %arg4[%c49, %c0_121] : memref<80x64xf32, #tpu.memory_space<vmem>>, vector<1x64xf32>
    tpu.vector_store %arg4[%c49, %c0_121], %0 {strides = array<i32>} : memref<80x64xf32, #tpu.memory_space<vmem>>, vector<1x64xf32>,
    %c40_122 = arith.constant 40 : index
    %c0_123 = arith.constant 0 : index
    %266 = tpu.strided_load %arg4[%c40_122, %c0_123] {strides = array<i32: 2, 1>} : memref<80x64xf32, #tpu.memory_space<vmem>>, vector<4x64xf32>
    %c41_124 = arith.constant 41 : index
    %c0_125 = arith.constant 0 : index
    %267 = tpu.strided_load %arg4[%c41_124, %c0_125] {strides = array<i32: 2, 1>} : memref<80x64xf32, #tpu.memory_space<vmem>>, vector<4x64xf32>
    %c42_126 = arith.constant 42 : index
    %c0_127 = arith.constant 0 : index
    %268 = tpu.strided_load %arg4[%c42_126, %c0_127] {strides = array<i32: 2, 1>} : memref<80x64xf32, #tpu.memory_space<vmem>>, vector<4x64xf32>
    %c43_128 = arith.constant 43 : index
    %c0_129 = arith.constant 0 : index
    %269 = tpu.strided_load %arg4[%c43_128, %c0_129] {strides = array<i32: 2, 1>} : memref<80x64xf32, #tpu.memory_space<vmem>>, vector<4x64xf32>
    %270 = tpu.concatenate %266, %267, %268, %269 in 1 : vector<4x64xf32>, vector<4x64xf32>, vector<4x64xf32>, vector<4x64xf32> -> vector<4x256xf32>
    %271 = tpu.concatenate %261, %270 in 0 : vector<4x256xf32>, vector<4x256xf32> -> vector<8x256xf32>
    %c776 = arith.constant 776 : index
    %c0_130 = arith.constant 0 : index
    %272 = vector.load %arg2[%c776, %c0_130] : memref<1072x64xf32, #tpu.memory_space<vmem>>, vector<256x64xf32>
    %cst_131 = arith.constant dense<0.000000e+00> : vector<8x64xf32>
    %273 = tpu.matmul %271, %272, %cst_131 {dimension_numbers = #tpu.dot_dimension_numbers<[1], [0], [0], [1], [0, 0, 1, 1], [], []>} : vector<8x256xf32>, vector<256x64xf32>, vector<8x64xf32> -> vector<8x64xf32>
    %c1032 = arith.constant 1032 : index
    %c0_132 = arith.constant 0 : index
    %274 = vector.load %arg2[%c1032, %c0_132] : memref<1072x64xf32, #tpu.memory_space<vmem>>, vector<1x64xf32>
    %275 = vector.broadcast %274 : vector<1x64xf32> to vector<8x64xf32>
    %276 = arith.addf %273, %275 : vector<8x64xf32>
    %cst_133 = arith.constant 0.000000e+00 : f32
    %277 = vector.broadcast %cst_133 : f32 to vector<8x64xf32>
    %278 = arith.cmpf oge, %276, %277 : vector<8x64xf32>
    %cst_134 = arith.constant 0.00999999977 : f32
    %279 = vector.broadcast %cst_134 : f32 to vector<8x64xf32>
    %280 = arith.mulf %279, %276 : vector<8x64xf32>
    %281 = arith.select %278, %276, %280 : vector<8x64xi1>, vector<8x64xf32>
    %c1040 = arith.constant 1040 : index
    %c0_135 = arith.constant 0 : index
    %282 = vector.load %arg2[%c1040, %c0_135] : memref<1072x64xf32, #tpu.memory_space<vmem>>, vector<4x64xf32>
    %c1048 = arith.constant 1048 : index
    %c0_136 = arith.constant 0 : index
    %283 = vector.load %arg2[%c1048, %c0_136] : memref<1072x64xf32, #tpu.memory_space<vmem>>, vector<4x64xf32>
    %284 = vector.extract_strided_slice %281 {offsets = [0, 0], sizes = [4, 64], strides = [1, 1]} : vector<8x64xf32> to vector<4x64xf32>
    %285 = vector.shape_cast %284 : vector<4x64xf32> to vector<1x4x64xf32>
    %cst_137 = arith.constant dense<0.000000e+00> : vector<1xf32>
    %286 = vector.multi_reduction <add>, %285, %cst_137 [1, 2] : vector<1x4x64xf32> to vector<1xf32>
    %287 = vector.shape_cast %286 : vector<1xf32> to vector<1x1x1xf32>
    %288 = vector.extract %287[0, 0, 0] : f32 from vector<1x1x1xf32>
    %289 = vector.broadcast %288 : f32 to vector<1x1xf32>
    %290 = arith.mulf %284, %284 : vector<4x64xf32>
    %291 = vector.shape_cast %290 : vector<4x64xf32> to vector<1x4x64xf32>
    %cst_138 = arith.constant dense<0.000000e+00> : vector<1xf32>
    %292 = vector.multi_reduction <add>, %291, %cst_138 [1, 2] : vector<1x4x64xf32> to vector<1xf32>
    %293 = vector.shape_cast %292 : vector<1xf32> to vector<1x1x1xf32>
    %294 = vector.extract %293[0, 0, 0] : f32 from vector<1x1x1xf32>
    %295 = vector.broadcast %294 : f32 to vector<1x1xf32>
    %cst_139 = arith.constant 3.906250e-03 : f32
    %296 = vector.broadcast %cst_139 : f32 to vector<1x1xf32>
    %297 = arith.mulf %289, %296 : vector<1x1xf32>
    %cst_140 = arith.constant 3.906250e-03 : f32
    %298 = vector.broadcast %cst_140 : f32 to vector<1x1xf32>
    %299 = arith.mulf %295, %298 : vector<1x1xf32>
    %300 = arith.mulf %297, %297 : vector<1x1xf32>
    %301 = arith.subf %299, %300 : vector<1x1xf32>
    %cst_141 = arith.constant 0.000000e+00 : f32
    %302 = vector.broadcast %cst_141 : f32 to vector<1x1xf32>
    %303 = arith.maximumf %301, %302 : vector<1x1xf32>
    %304 = vector.broadcast %297 : vector<1x1xf32> to vector<4x64xf32>
    %305 = arith.subf %284, %304 : vector<4x64xf32>
    %cst_142 = arith.constant 9.99999974E-6 : f32
    %306 = vector.broadcast %cst_142 : f32 to vector<1x1xf32>
    %307 = arith.addf %303, %306 : vector<1x1xf32>
    %308 = math.rsqrt %307 : vector<1x1xf32>
    %309 = vector.broadcast %308 : vector<1x1xf32> to vector<4x64xf32>
    %310 = arith.mulf %305, %309 : vector<4x64xf32>
    %311 = arith.mulf %310, %282 : vector<4x64xf32>
    %312 = arith.addf %311, %283 : vector<4x64xf32>
    %313 = vector.extract_strided_slice %281 {offsets = [4, 0], sizes = [4, 64], strides = [1, 1]} : vector<8x64xf32> to vector<4x64xf32>
    %314 = vector.shape_cast %313 : vector<4x64xf32> to vector<1x4x64xf32>
    %cst_143 = arith.constant dense<0.000000e+00> : vector<1xf32>
    %315 = vector.multi_reduction <add>, %314, %cst_143 [1, 2] : vector<1x4x64xf32> to vector<1xf32>
    %316 = vector.shape_cast %315 : vector<1xf32> to vector<1x1x1xf32>
    %317 = vector.extract %316[0, 0, 0] : f32 from vector<1x1x1xf32>
    %318 = vector.broadcast %317 : f32 to vector<1x1xf32>
    %319 = arith.mulf %313, %313 : vector<4x64xf32>
    %320 = vector.shape_cast %319 : vector<4x64xf32> to vector<1x4x64xf32>
    %cst_144 = arith.constant dense<0.000000e+00> : vector<1xf32>
    %321 = vector.multi_reduction <add>, %320, %cst_144 [1, 2] : vector<1x4x64xf32> to vector<1xf32>
    %322 = vector.shape_cast %321 : vector<1xf32> to vector<1x1x1xf32>
    %323 = vector.extract %322[0, 0, 0] : f32 from vector<1x1x1xf32>
    %324 = vector.broadcast %323 : f32 to vector<1x1xf32>
    %cst_145 = arith.constant 3.906250e-03 : f32
    %325 = vector.broadcast %cst_145 : f32 to vector<1x1xf32>
    %326 = arith.mulf %318, %325 : vector<1x1xf32>
    %cst_146 = arith.constant 3.906250e-03 : f32
    %327 = vector.broadcast %cst_146 : f32 to vector<1x1xf32>
    %328 = arith.mulf %324, %327 : vector<1x1xf32>
    %329 = arith.mulf %326, %326 : vector<1x1xf32>
    %330 = arith.subf %328, %329 : vector<1x1xf32>
    %cst_147 = arith.constant 0.000000e+00 : f32
    %331 = vector.broadcast %cst_147 : f32 to vector<1x1xf32>
    %332 = arith.maximumf %330, %331 : vector<1x1xf32>
    %333 = vector.broadcast %326 : vector<1x1xf32> to vector<4x64xf32>
    %334 = arith.subf %313, %333 : vector<4x64xf32>
    %cst_148 = arith.constant 9.99999974E-6 : f32
    %335 = vector.broadcast %cst_148 : f32 to vector<1x1xf32>
    %336 = arith.addf %332, %335 : vector<1x1xf32>
    %337 = math.rsqrt %336 : vector<1x1xf32>
    %338 = vector.broadcast %337 : vector<1x1xf32> to vector<4x64xf32>
    %339 = arith.mulf %334, %338 : vector<4x64xf32>
    %340 = arith.mulf %339, %282 : vector<4x64xf32>
    %341 = arith.addf %340, %283 : vector<4x64xf32>
    %342 = tpu.concatenate %312, %341 in 0 : vector<4x64xf32>, vector<4x64xf32> -> vector<8x64xf32>
    %c1056 = arith.constant 1056 : index
    %c0_149 = arith.constant 0 : index
    %343 = vector.load %arg2[%c1056, %c0_149] : memref<1072x64xf32, #tpu.memory_space<vmem>>, vector<4x64xf32>
    %c1064 = arith.constant 1064 : index
    %c0_150 = arith.constant 0 : index
    %344 = vector.load %arg2[%c1064, %c0_150] : memref<1072x64xf32, #tpu.memory_space<vmem>>, vector<1x64xf32>
    %345 = vector.extract_strided_slice %344 {offsets = [0, 0], sizes = [1, 1], strides = [1, 1]} : vector<1x64xf32> to vector<1x1xf32>
    %346 = vector.extract_strided_slice %342 {offsets = [0, 0], sizes = [4, 64], strides = [1, 1]} : vector<8x64xf32> to vector<4x64xf32>
    %347 = arith.mulf %346, %343 : vector<4x64xf32>
    %348 = vector.shape_cast %347 : vector<4x64xf32> to vector<1x4x64xf32>
    %cst_151 = arith.constant dense<0.000000e+00> : vector<1xf32>
    %349 = vector.multi_reduction <add>, %348, %cst_151 [1, 2] : vector<1x4x64xf32> to vector<1xf32>
    %350 = vector.shape_cast %349 : vector<1xf32> to vector<1x1x1xf32>
    %351 = vector.extract %350[0, 0, 0] : f32 from vector<1x1x1xf32>
    %352 = vector.broadcast %351 : f32 to vector<1x1xf32>
    %353 = arith.addf %352, %345 : vector<1x1xf32>
    %cst_152 = arith.constant 0.000000e+00 : f32
    %354 = vector.broadcast %cst_152 : f32 to vector<1x1xf32>
    %355 = arith.cmpf oge, %353, %354 : vector<1x1xf32>
    %cst_153 = arith.constant 0.00999999977 : f32
    %356 = vector.broadcast %cst_153 : f32 to vector<1x1xf32>
    %357 = arith.mulf %356, %353 : vector<1x1xf32>
    %358 = arith.select %355, %353, %357 : vector<1x1xi1>, vector<1x1xf32>
    %359 = vector.extract_strided_slice %342 {offsets = [4, 0], sizes = [4, 64], strides = [1, 1]} : vector<8x64xf32> to vector<4x64xf32>
    %360 = arith.mulf %359, %343 : vector<4x64xf32>
    %361 = vector.shape_cast %360 : vector<4x64xf32> to vector<1x4x64xf32>
    %cst_154 = arith.constant dense<0.000000e+00> : vector<1xf32>
    %362 = vector.multi_reduction <add>, %361, %cst_154 [1, 2] : vector<1x4x64xf32> to vector<1xf32>
    %363 = vector.shape_cast %362 : vector<1xf32> to vector<1x1x1xf32>
    %364 = vector.extract %363[0, 0, 0] : f32 from vector<1x1x1xf32>
    %365 = vector.broadcast %364 : f32 to vector<1x1xf32>
    %366 = arith.addf %365, %345 : vector<1x1xf32>
    %cst_155 = arith.constant 0.000000e+00 : f32
    %367 = vector.broadcast %cst_155 : f32 to vector<1x1xf32>
    %368 = arith.cmpf oge, %366, %367 : vector<1x1xf32>
    %cst_156 = arith.constant 0.00999999977 : f32
    %369 = vector.broadcast %cst_156 : f32 to vector<1x1xf32>
    %370 = arith.mulf %369, %366 : vector<1x1xf32>
    %371 = arith.select %368, %366, %370 : vector<1x1xi1>, vector<1x1xf32>
    %372 = tpu.concatenate %358, %371 in 1 : vector<1x1xf32>, vector<1x1xf32> -> vector<1x2xf32>
    %c0_157 = arith.constant 0 : index
    %c0_158 = arith.constant 0 : index
    %373 = vector.load %arg3[%c0_157, %c0_158] : memref<1x2xf32, #tpu.memory_space<vmem>>, vector<1x2xf32>
    tpu.vector_store %arg3[%c0_157, %c0_158], %372 {strides = array<i32>} : memref<1x2xf32, #tpu.memory_space<vmem>>, vector<1x2xf32>,
    return
  }
  func.func @transform_0(%arg0: i32) -> (i32, i32) {
    %c0_i32 = arith.constant 0 : i32
    %c0_i32_0 = arith.constant 0 : i32
    return %arg0, %c0_i32 : i32, i32
  }
  func.func @transform_1(%arg0: i32) -> (i32, i32) {
    %c0_i32 = arith.constant 0 : i32
    %c0_i32_0 = arith.constant 0 : i32
    %c0_i32_1 = arith.constant 0 : i32
    return %c0_i32, %c0_i32_0 : i32, i32
  }
  func.func @transform_2(%arg0: i32) -> (i32, i32) {
    %c0_i32 = arith.constant 0 : i32
    %c0_i32_0 = arith.constant 0 : i32
    return %c0_i32, %arg0 : i32, i32
  }
}

</mosaic_0001>

<bundles_post_ra>
// kernel: _lambda_.1
= control target key start
LH: loop header
LB: loop body
LE: loop exit
PB: predicated region body
PF: predicated region fallthrough
CT: control target
= control target key end

     0   :  { %s2216_s0 = inlined_call_operand.vmem [shape: f32[64,128], index: 0, kind: input, shape index: {}]   ;;  %s2217_s1 = inlined_call_operand.vmem [shape: f32[1072,64], index: 1, kind: input, shape index: {}]   ;;  %s2218_s2 = inlined_call_operand.hbm [shape: f32[1,2], index: 2, kind: output, shape index: {}]  }
   0x1   :  { %v20_v0 = vld [vmem:[%s2217_s1] sm:$0xff]  ;;  %v21_v1 = vld [vmem:[%s2217_s1 + $0x8] sm:$0xff]  ;;  %v22_v2 = vld [vmem:[%s2217_s1 + $0x10] sm:$0xff] }
   0x2   :  { %v1320_v3 = vpack.c.bf16 %v21_v1, %v20_v0  ;;  %v23_v4 = vld [vmem:[%s2217_s1 + $0x18] sm:$0xff]  ;;  %v24_v6 = vld [vmem:[%s2217_s1 + $0x20] sm:$0xff]  ;;  %v25_v7 = vld [vmem:[%s2217_s1 + $0x28] sm:$0xff] }
   0x3   :  { %v1324_v5 = vpack.c.bf16 %v23_v4, %v22_v2  ;;  %v1328_v8 = vpack.c.bf16 %v25_v7, %v24_v6  ;;  %v12_v9 = vld [vmem:[%s2216_s0] sm:$0xff]  ;;  %v26_v10 = vld [vmem:[%s2217_s1 + $0x30] sm:$0xff]  ;;  %v27_v11 = vld [vmem:[%s2217_s1 + $0x38] sm:$0xff] }
   0x4   :  { %1321 = vmatprep.subr.bf16.mxu0 %v1320_v3  ;;  %1308 = vmatprep.mubr.f32.mxu0 %v12_v9 }
   0x5   :  { %1323 = vmatpush3.bf16.msra.mxu0 %v1320_v3 }
   0x6   :  { %1325 = vmatprep.subr.bf16.mxu0 %v1324_v5 }
   0x9   :  { %1327 = vmatpush3.bf16.msra.mxu0 %v1324_v5 }
   0xa   :  { %7 = vsyncpa [#allocation4], 0  ;;  %1329 = vmatprep.subr.bf16.mxu0 %v1328_v8  ;;  %v1332_v12 = vpack.c.bf16 %v27_v11, %v26_v10  ;;  %v28_v13 = vld [vmem:[%s2217_s1 + $0x40] sm:$0xff]  ;;  %v29_v14 = vld [vmem:[%s2217_s1 + $0x48] sm:$0xff]  ;;  %vm178_vm1 = vcmask 523264   ;;  %vm301_vm9 = vcmask 516096  }
   0xb   :  { %v1336_v15 = vpack.c.bf16 %v29_v14, %v28_v13  ;;  %v30_v16 = vld [vmem:[%s2217_s1 + $0x50] sm:$0xff]  ;;  %v31_v17 = vld [vmem:[%s2217_s1 + $0x58] sm:$0xff]  ;;  %v32_v19 = vld [vmem:[%s2217_s1 + $0x60] sm:$0xff]  ;;  %s1569_s28 = smov 64   ;;  %s1570_s27 = smov 1  }
   0xc   :  { %v1340_v18 = vpack.c.bf16 %v31_v17, %v30_v16  ;;  %v33_v20 = vld [vmem:[%s2217_s1 + $0x68] sm:$0xff]  ;;  %v34_v22 = vld [vmem:[%s2217_s1 + $0x70] sm:$0xff]  ;;  %v35_v23 = vld [vmem:[%s2217_s1 + $0x78] sm:$0xff] }
   0xd   :  { %1331 = vmatpush3.bf16.msra.mxu0 %v1328_v8  ;;  %v1344_v21 = vpack.c.bf16 %v33_v20, %v32_v19  ;;  %v1348_v24 = vpack.c.bf16 %v35_v23, %v34_v22  ;;  %v13_v25 = vld [vmem:[%s2216_s0 + $0x8] sm:$0xff]  ;;  %v14_v26 = vld [vmem:[%s2216_s0 + $0x10] sm:$0xff]  ;;  %v15_v27 = vld [vmem:[%s2216_s0 + $0x18] sm:$0xff] }
   0xe   :  { %1333 = vmatprep.subr.bf16.mxu0 %v1332_v12  ;;  %v16_v28 = vld [vmem:[%s2216_s0 + $0x20] sm:$0xff]  ;;  %v17_v29 = vld [vmem:[%s2216_s0 + $0x28] sm:$0xff]  ;;  %v18_v30 = vld [vmem:[%s2216_s0 + $0x30] sm:$0xff] }
   0xf   :  { %v19_v31 = vld [vmem:[%s2216_s0 + $0x38] sm:$0xff]  ;;  %v1131_v32 = vld [vmem:[%s2217_s1 + $0x80] ss:$0 sm:$0xff] }
  0x11   :  { %1335 = vmatpush3.bf16.msra.mxu0 %v1332_v12 }
  0x12   :  { %1337 = vmatprep.subr.bf16.mxu0 %v1336_v15 }
  0x15   :  { %1339 = vmatpush3.bf16.msra.mxu0 %v1336_v15 }
  0x16   :  { %1341 = vmatprep.subr.bf16.mxu0 %v1340_v18 }
  0x19   :  { %1343 = vmatpush3.bf16.msra.mxu0 %v1340_v18 }
  0x1a   :  { %1345 = vmatprep.subr.bf16.mxu0 %v1344_v21 }
  0x1d   :  { %1347 = vmatpush3.bf16.msra.mxu0 %v1344_v21 }
  0x1e   :  { %1349 = vmatprep.subr.bf16.mxu0 %v1348_v24 }
  0x21   :  { %1351 = vmatpush3.bf16.msra.mxu0 %v1348_v24 }
  0x24   :  { %1309 = vmatmul.mubr.f32.vlgmr.msra.gmra.mrb[0].mxu0 %v13_v25 }
  0x25   :  { %1311 = vmatprep.mubr.f32.mxu0 %v14_v26 }
  0x28   :  { %1312 = vmatmul.mubr.f32.gmra.mrb[2].mxu0 %v15_v27 }
  0x29   :  { %1314 = vmatprep.mubr.f32.mxu0 %v16_v28 }
  0x2c   :  { %1315 = vmatmul.mubr.f32.gmra.mrb[4].mxu0 %v17_v29 }
  0x2d   :  { %1317 = vmatprep.mubr.f32.mxu0 %v18_v30 }
  0x30   :  { %1318 = vmatmul.mubr.f32.gmra.mrb[6].mxu0 %v19_v31 }
  0xf7   :  { %v1310_v33 = vpop.f32.mrb[0].mxu0 }
  0xf8   :  { %v113_v34 = vadd.f32 %v1310_v33, %v1131_v32  ;;  %v107_v35 = vpop.f32.mrb[1].mxu0 }
  0xf9   :  { %v108_v36 = vadd.f32 %v1131_v32, %v107_v35 }
  0xfa   :  { %vm147_vm0 = vcmp.ge.f32.partialorder %v113_v34, 0.0  ;;  %v155_v37 = vmul.f32 0.01, %v113_v34 }
  0xfb   :  { %vm146_vm2 = vcmp.ge.f32.partialorder %v108_v36, 0.0  ;;  %v154_v38 = vmul.f32 0.01, %v108_v36  ;;  %v1313_v39 = vpop.f32.mrb[2].mxu0 }
  0xfc   :  { %v1662_v40 = vsel %vm147_vm0, %v113_v34, %v155_v37  ;;  %v123_v41 = vadd.f32 %v1313_v39, %v1131_v32  ;;  %v117_v42 = vpop.f32.mrb[3].mxu0  ;;  %v1568_v37 = vmov 0.0   ;;  %v402_v39 = vld [vmem:[%s2217_s1 + $0x150] sm:$0xff]  ;;  %vm873_vm0 = vcmask 1043456  }
  0xfd   :  { %v197_v43 = vmul.f32 %v1662_v40, %v1662_v40  ;;  %v1666_v44 = vsel %vm146_vm2, %v108_v36, %v154_v38  ;;  %v118_v45 = vadd.f32 %v1131_v32, %v117_v42  ;;  %v180_v46 = vsel %vm178_vm1, %v1662_v40, 0.0  ;;  %307 = vst.msk [vmem:[#allocation2 + $0x21] sm:$0x1] %vm301_vm9, %v1568_v37  ;;  %302 = vst.msk [vmem:[#allocation2] sm:$0x1] %vm301_vm9, %v1568_v37  ;;  %v401_v38 = vld [vmem:[%s2217_s1 + $0x148] sm:$0xff] }
  0xfe   :  { %v196_v47 = vmul.f32 %v1666_v44, %v1666_v44  ;;  %vm149_vm3 = vcmp.ge.f32.partialorder %v123_v41, 0.0  ;;  %v157_v48 = vmul.f32 0.01, %v123_v41  ;;  %v179_v49 = vsel %vm178_vm1, %v1666_v44, 0.0  ;;  %343 = vst.msk [vmem:[#allocation2 + $0x28] sm:$0x1] %vm301_vm9, %v1568_v37 }
  0xff   :  { %vm148_vm4 = vcmp.ge.f32.partialorder %v118_v45, 0.0  ;;  %v156_v50 = vmul.f32 0.01, %v118_v45  ;;  %v1316_v51 = vpop.f32.mrb[4].mxu0  ;;  %v181_v52 = vadd.f32 %v180_v46, %v179_v49  ;;  %v201_v57 = vsel %vm178_vm1, %v197_v43, 0.0  ;;  %v386_v43 = vld [vmem:[%s2217_s1 + $0xd0] sm:$0xff] }
 0x100   :  { %v133_v53 = vadd.f32 %v1316_v51, %v1131_v32  ;;  %v127_v54 = vpop.f32.mrb[5].mxu0  ;;  %v1674_v55 = vsel %vm149_vm3, %v123_v41, %v157_v48  ;;  %v200_v56 = vsel %vm178_vm1, %v196_v47, 0.0  ;;  %348 = vst.msk [vmem:[#allocation2 + $0x49] sm:$0x1] %vm301_vm9, %v1568_v37  ;;  %v385_v41 = vld [vmem:[%s2217_s1 + $0xc8] sm:$0xff]  ;;  %v1352_v42 = vpack.c.bf16 %v402_v39, %v401_v38  ;;  %v404_v46 = vld [vmem:[%s2217_s1 + $0x160] sm:$0xff] }
 0x101   :  { %v1678_v58 = vsel %vm148_vm4, %v118_v45, %v156_v50  ;;  %v128_v59 = vadd.f32 %v1131_v32, %v127_v54  ;;  %v184_v60 = vsel %vm178_vm1, %v1674_v55, 0.0  ;;  %v199_v61 = vmul.f32 %v1674_v55, %v1674_v55  ;;  %v403_v45 = vld [vmem:[%s2217_s1 + $0x158] sm:$0xff]  ;;  %v388_v50 = vld [vmem:[%s2217_s1 + $0xe0] sm:$0xff]  ;;  %v405_v51 = vld [vmem:[%s2217_s1 + $0x168] sm:$0xff] }
 0x102   :  { %vm151_vm5 = vcmp.ge.f32.partialorder %v133_v53, 0.0  ;;  %v159_v62 = vmul.f32 0.01, %v133_v53  ;;  %v182_v63 = vsel %vm178_vm1, %v1678_v58, 0.0  ;;  %v198_v0 = vmul.f32 %v1678_v58, %v1678_v58  ;;  %v387_v49 = vld [vmem:[%s2217_s1 + $0xd8] sm:$0xff]  ;;  %1353 = vmatprep.subr.bf16.mxu1 %v1352_v42 }
 0x103   :  { %vm150_vm6 = vcmp.ge.f32.partialorder %v128_v59, 0.0  ;;  %v158_v1 = vmul.f32 0.01, %v128_v59  ;;  %v1319_v2 = vpop.f32.mrb[6].mxu0  ;;  %v183_v3 = vadd.f32 %v182_v63, %v181_v52  ;;  %v202_v4 = vadd.f32 %v201_v57, %v200_v56  ;;  %v406_v52 = vld [vmem:[%s2217_s1 + $0x170] sm:$0xff]  ;;  %v389_v56 = vld [vmem:[%s2217_s1 + $0xe8] sm:$0xff] }
 0x104   :  { %v1688_v5 = vsel %vm151_vm5, %v133_v53, %v159_v62  ;;  %v143_v6 = vadd.f32 %v1319_v2, %v1131_v32  ;;  %v137_v7 = vpop.f32.mrb[7].mxu0  ;;  %v203_v8 = vsel %vm178_vm1, %v198_v0, 0.0  ;;  %v205_v9 = vsel %vm178_vm1, %v199_v61, 0.0  ;;  %v390_v57 = vld [vmem:[%s2217_s1 + $0xf0] sm:$0xff]  ;;  %v391_v63 = vld [vmem:[%s2217_s1 + $0xf8] sm:$0xff]  ;;  %v392_v0 = vld [vmem:[%s2217_s1 + $0x100] sm:$0xff] }
 0x105   :  { %v258_v10 = vmul.f32 %v1688_v5, %v1688_v5  ;;  %v1694_v11 = vsel %vm150_vm6, %v128_v59, %v158_v1  ;;  %v138_v12 = vadd.f32 %v1131_v32, %v137_v7  ;;  %v185_v13 = vadd.f32 %v184_v60, %v183_v3  ;;  %v407_v59 = vld [vmem:[%s2217_s1 + $0x178] sm:$0xff]  ;;  %v408_v60 = vld [vmem:[%s2217_s1 + $0x180] sm:$0xff]  ;;  %v409_v1 = vld [vmem:[%s2217_s1 + $0x188] sm:$0xff] }
 0x106   :  { %v257_v14 = vmul.f32 %v1694_v11, %v1694_v11  ;;  %vm153_vm7 = vcmp.ge.f32.partialorder %v143_v6, 0.0  ;;  %v161_v15 = vmul.f32 0.01, %v143_v6  ;;  %v204_v16 = vadd.f32 %v203_v8, %v202_v4  ;;  %v410_v2 = vld [vmem:[%s2217_s1 + $0x190] sm:$0xff]  ;;  %v393_v7 = vld [vmem:[%s2217_s1 + $0x108] sm:$0xff] }
 0x107   :  { %vm152_vm8 = vcmp.ge.f32.partialorder %v138_v12, 0.0  ;;  %v160_v17 = vmul.f32 0.01, %v138_v12  ;;  %186 = vadd.xlane.f32.xlu0 %v185_v13  ;;  %v240_v18 = vsel %vm178_vm1, %v1694_v11, 0.0  ;;  %v241_v19 = vsel %vm178_vm1, %v1688_v5, 0.0  ;;  %v394_v8 = vld [vmem:[%s2217_s1 + $0x110] sm:$0xff] }
 0x108   :  { %v206_v20 = vadd.f32 %v205_v9, %v204_v16  ;;  %v261_v21 = vsel %vm178_vm1, %v257_v14, 0.0  ;;  %v1705_v23 = vsel %vm153_vm7, %v143_v6, %v161_v15  ;;  %v242_v24 = vadd.f32 %v241_v19, %v240_v18  ;;  %v396_v18 = vld [vmem:[%s2217_s1 + $0x120] sm:$0xff] }
 0x109   :  { %v1703_v22 = vsel %vm152_vm8, %v138_v12, %v160_v17  ;;  %v262_v25 = vsel %vm178_vm1, %v258_v10, 0.0  ;;  %v245_v30 = vsel %vm178_vm1, %v1705_v23, 0.0  ;;  %v260_v31 = vmul.f32 %v1705_v23, %v1705_v23  ;;  %v411_v10 = vld [vmem:[%s2217_s1 + $0x198] sm:$0xff]  ;;  %v412_v12 = vld [vmem:[%s2217_s1 + $0x1a0] sm:$0xff] }
 0x10a   :  { %v243_v26 = vsel %vm178_vm1, %v1703_v22, 0.0  ;;  %v259_v27 = vmul.f32 %v1703_v22, %v1703_v22  ;;  %v263_v29 = vadd.f32 %v262_v25, %v261_v21  ;;  %v1354_v47 = vpack.c.bf16 %v386_v43, %v385_v41  ;;  %v395_v17 = vld [vmem:[%s2217_s1 + $0x118] sm:$0xff]  ;;  %v413_v21 = vld [vmem:[%s2217_s1 + $0x1a8] sm:$0xff] }
 0x10b   :  { %207 = vadd.xlane.f32.xlu0 %v206_v20  ;;  %v244_v28 = vadd.f32 %v243_v26, %v242_v24  ;;  %v266_v35 = vsel %vm178_vm1, %v260_v31, 0.0  ;;  %v1356_v48 = vpack.c.bf16 %v404_v46, %v403_v45  ;;  %v1358_v53 = vpack.c.bf16 %v388_v50, %v387_v49  ;;  %v414_v24 = vld [vmem:[%s2217_s1 + $0x1b0] sm:$0xff] }
 0x10c   :  { %v264_v32 = vsel %vm178_vm1, %v259_v27, 0.0  ;;  %1355 = vmatpush3.bf16.msra.mxu1 %v1354_v47  ;;  %v1360_v54 = vpack.c.bf16 %v406_v52, %v405_v51  ;;  %v1362_v61 = vpack.c.bf16 %v390_v57, %v389_v56  ;;  %v1364_v62 = vpack.c.bf16 %v408_v60, %v407_v59  ;;  %v398_v31 = vld [vmem:[%s2217_s1 + $0x130] sm:$0xff] }
 0x10d   :  { %v246_v33 = vadd.f32 %v245_v30, %v244_v28  ;;  %v265_v34 = vadd.f32 %v264_v32, %v263_v29  ;;  %1357 = vmatprep.subr.bf16.mxu1 %v1356_v48  ;;  %v1366_v3 = vpack.c.bf16 %v392_v0, %v391_v63  ;;  %v1368_v6 = vpack.c.bf16 %v410_v2, %v409_v1  ;;  %v397_v30 = vld [vmem:[%s2217_s1 + $0x128] sm:$0xff] }
 0x10e   :  { %v1370_v14 = vpack.c.bf16 %v394_v8, %v393_v7  ;;  %v1372_v16 = vpack.c.bf16 %v412_v12, %v411_v10  ;;  %v1374_v27 = vpack.c.bf16 %v396_v18, %v395_v17  ;;  %v1376_v29 = vpack.c.bf16 %v414_v24, %v413_v21  ;;  %v173_v17 = vld [vmem:[%s2217_s1 + $0xa0] sm:$0xff]  ;;  %v170_v18 = vld [vmem:[%s2217_s1 + $0x88] sm:$0xff] }
 0x10f   :  { %247 = vadd.xlane.f32.xlu1 %v246_v33  ;;  %v267_v36 = vadd.f32 %v266_v35, %v265_v34  ;;  %v1378_v39 = vpack.c.bf16 %v398_v31, %v397_v30  ;;  %v177_v21 = vld [vmem:[%s2217_s1 + $0xc0] sm:$0xff]  ;;  %v174_v24 = vld [vmem:[%s2217_s1 + $0xa8] sm:$0xff]  ;;  %v415_v30 = vld [vmem:[%s2217_s1 + $0x1b8] sm:$0xff]  ;;  %vm988_vm3 = vcmask 519168   ;;  %vm1113_vm5 = vcmask 7168  }
 0x110   :  { %1359 = vmatpush3.bf16.msra.mxu1 %v1358_v53  ;;  %v416_v31 = vld [vmem:[%s2217_s1 + $0x1c0] sm:$0xff]  ;;  %vm1115_vm6 = vcmask 8192  }
 0x111   :  { %1361 = vmatprep.subr.bf16.mxu1 %v1360_v54 }
 0x113   :  { %268 = vadd.xlane.f32.xlu1 %v267_v36 }
 0x114   :  { %1363 = vmatpush3.bf16.msra.mxu1 %v1362_v61 }
 0x115   :  { %1365 = vmatprep.subr.bf16.mxu1 %v1364_v62 }
 0x118   :  { %1367 = vmatpush3.bf16.msra.mxu1 %v1366_v3 }
 0x119   :  { %1369 = vmatprep.subr.bf16.mxu1 %v1368_v6 }
 0x11c   :  { %1371 = vmatpush3.bf16.msra.mxu1 %v1370_v14 }
 0x11d   :  { %1373 = vmatprep.subr.bf16.mxu1 %v1372_v16 }
 0x120   :  { %1375 = vmatpush3.bf16.msra.mxu1 %v1374_v27 }
 0x121   :  { %1377 = vmatprep.subr.bf16.mxu1 %v1376_v29 }
 0x124   :  { %1379 = vmatpush3.bf16.msra.mxu1 %v1378_v39 }
 0x194   :  { %v187_v4 = vpop.xlane.xlu0 %186 }
 0x195   :  { %v188_v9 = vrot.slane %v187_v4, 4 }
 0x197   :  { %v189_v13 = vadd.f32 %v188_v9, %v187_v4 }
 0x198   :  { %v208_v15 = vpop.xlane.xlu0 %207 }
 0x199   :  { %v190_v19 = vrot.slane %v189_v13, 2  ;;  %v209_v20 = vrot.slane %v208_v15, 4 }
 0x19b   :  { %v210_v25 = vadd.f32 %v209_v20, %v208_v15  ;;  %v191_v26 = vadd.f32 %v190_v19, %v189_v13  ;;  %v172_v15 = vld [vmem:[%s2217_s1 + $0x98] sm:$0xff] }
 0x19c   :  { %v248_v28 = vpop.xlane.xlu1 %247 }
 0x19d   :  { %v211_v32 = vrot.slane %v210_v25, 2  ;;  %v249_v33 = vrot.slane %v248_v28, 4  ;;  %v192_v34 = vrot.slane %v191_v26, 1 }
 0x19f   :  { %v250_v35 = vadd.f32 %v249_v33, %v248_v28  ;;  %v193_v36 = vadd.f32 %v192_v34, %v191_v26  ;;  %v212_v38 = vadd.f32 %v211_v32, %v210_v25  ;;  %v175_v25 = vld [vmem:[%s2217_s1 + $0xb0] sm:$0xff]  ;;  %v1380_v32 = vpack.c.bf16 %v416_v31, %v415_v30  ;;  %v399_v33 = vld [vmem:[%s2217_s1 + $0x138] sm:$0xff]  ;;  %v400_v34 = vld [vmem:[%s2217_s1 + $0x140] sm:$0xff] }
 0x1a0   :  { %v269_v41 = vpop.xlane.xlu1 %268 }
 0x1a1   :  { %v251_v42 = vrot.slane %v250_v35, 2  ;;  %v270_v43 = vrot.slane %v269_v41, 4  ;;  %1448 = vpush %v193_v36  ;;  %v213_v45 = vrot.slane %v212_v38, 1  ;;  %1381 = vmatprep.subr.bf16.mxu1 %v1380_v32 }
 0x1a3   :  { %v271_v46 = vadd.f32 %v270_v43, %v269_v41  ;;  %v214_v47 = vadd.f32 %v213_v45, %v212_v38  ;;  %v252_v48 = vadd.f32 %v251_v42, %v250_v35  ;;  %v1382_v41 = vpack.c.bf16 %v400_v34, %v399_v33 }
 0x1a5   :  { %v272_v49 = vrot.slane %v271_v46, 2  ;;  %1450 = vpush %v214_v47  ;;  %v253_v50 = vrot.slane %v252_v48, 1  ;;  %1383 = vmatpush3.bf16.msra.mxu1 %v1382_v41 }
 0x1a7   :  { %v254_v51 = vadd.f32 %v253_v50, %v252_v48  ;;  %v273_v52 = vadd.f32 %v272_v49, %v271_v46 }
 0x1a9   :  { %1452 = vpush %v254_v51  ;;  %v274_v53 = vrot.slane %v273_v52, 1 }
 0x1ab   :  { %v275_v54 = vadd.f32 %v274_v53, %v273_v52 }
 0x1ad   :  { %1454 = vpush %v275_v54 }
 0x1d2   :  { %s1449_s29 = spop %1448 }
 0x1d3   :  { %v195_v56 = vstv %s1449_s29 }
 0x1d4   :  { %v217_v57 = vmul.f32 0.00048828125, %v195_v56 }
 0x1d6   :  { %s1451_s30 = spop %1450  ;;  %v219_v61 = vmul.f32 %v217_v57, %v217_v57  ;;  %v222_v10 = vsub.f32 %v1666_v44, %v217_v57  ;;  %v223_v12 = vsub.f32 %v1662_v40, %v217_v57  ;;  %v224_v13 = vsub.f32 %v1678_v58, %v217_v57  ;;  %v171_v40 = vld [vmem:[%s2217_s1 + $0x90] sm:$0xff]  ;;  %v176_v44 = vld [vmem:[%s2217_s1 + $0xb8] sm:$0xff] }
 0x1d7   :  { %v216_v59 = vstv %s1451_s30  ;;  %v225_v14 = vsub.f32 %v1674_v55, %v217_v57 }
 0x1d8   :  { %v218_v60 = vmul.f32 0.00048828125, %v216_v59 }
 0x1da   :  { %v220_v62 = vsub.f32 %v218_v60, %v219_v61  ;;  %s1453_s0 = spop %1452 }
 0x1db   :  { %v256_v63 = vstv %s1453_s0 }
 0x1dc   :  { %v221_v0 = vmax.f32 %v220_v62, 0.0  ;;  %v278_v1 = vmul.f32 0.00048828125, %v256_v63 }
 0x1de   :  { %v226_v2 = vadd.f32 1e-05, %v221_v0  ;;  %s1455_s3 = spop %1454  ;;  %v280_v6 = vmul.f32 %v278_v1, %v278_v1  ;;  %v283_v42 = vsub.f32 %v1694_v11, %v278_v1  ;;  %v284_v43 = vsub.f32 %v1688_v5, %v278_v1 }
 0x1df   :  { %v277_v3 = vstv %s1455_s3  ;;  %v285_v45 = vsub.f32 %v1703_v22, %v278_v1  ;;  %v286_v46 = vsub.f32 %v1705_v23, %v278_v1 }
 0x1e0   :  { %1528 = vrsqrt.f32 %v226_v2  ;;  %v279_v4 = vmul.f32 0.00048828125, %v277_v3 }
 0x1e2   :  { %v281_v7 = vsub.f32 %v279_v4, %v280_v6 }
 0x1e4   :  { %v282_v8 = vmax.f32 %v281_v7, 0.0 }
 0x1e6   :  { %v287_v9 = vadd.f32 1e-05, %v282_v8 }
 0x1e8   :  { %1530 = vrsqrt.f32 %v287_v9 }
 0x1ea   :  { %v1529_v16 = vpop.eup %1528 }
 0x1eb   :  { %v230_v55 = vmul.f32 %v1529_v16, %v224_v13  ;;  %v231_v58 = vmul.f32 %v1529_v16, %v225_v14  ;;  %v228_v19 = vmul.f32 %v1529_v16, %v222_v10  ;;  %v229_v20 = vmul.f32 %v1529_v16, %v223_v12 }
 0x1ed   :  { %v234_v26 = vmul.f32 %v230_v55, %v172_v15  ;;  %v235_v27 = vmul.f32 %v231_v58, %v173_v17  ;;  %v232_v28 = vmul.f32 %v228_v19, %v170_v18  ;;  %v233_v29 = vmul.f32 %v229_v20, %v171_v40 }
 0x1ef   :  { %v238_v35 = vadd.f32 %v234_v26, %v176_v44  ;;  %v239_v36 = vadd.f32 %v235_v27, %v177_v21  ;;  %v236_v38 = vadd.f32 %v232_v28, %v174_v24  ;;  %v237_v39 = vadd.f32 %v233_v29, %v175_v25 }
 0x1f1   :  { %305 = vst.msk [vmem:[#allocation2 + $0x11] sm:$0xff] %vm178_vm1, %v238_v35  ;;  %306 = vst.msk [vmem:[#allocation2 + $0x19] sm:$0xff] %vm178_vm1, %v239_v36  ;;  %v1132_v35 = vld [vmem:[%s2217_s1 + $0x1c8] ss:$0 sm:$0xff] }
 0x1f2   :  { %303 = vst.msk [vmem:[#allocation2 + $0x1] sm:$0xff] %vm178_vm1, %v236_v38  ;;  %304 = vst.msk [vmem:[#allocation2 + $0x9] sm:$0xff] %vm178_vm1, %v237_v39  ;;  %v1531_v47 = vpop.eup %1530 }
 0x1f3   :  { %v291_v48 = vmul.f32 %v1531_v47, %v285_v45  ;;  %v289_v49 = vmul.f32 %v1531_v47, %v283_v42  ;;  %v290_v50 = vmul.f32 %v1531_v47, %v284_v43  ;;  %v292_v11 = vmul.f32 %v1531_v47, %v286_v46 }
 0x1f5   :  { %v295_v51 = vmul.f32 %v291_v48, %v172_v15  ;;  %v293_v5 = vmul.f32 %v289_v49, %v170_v18  ;;  %v294_v52 = vmul.f32 %v290_v50, %v171_v40  ;;  %v296_v22 = vmul.f32 %v292_v11, %v173_v17 }
 0x1f7   :  { %v299_v53 = vadd.f32 %v295_v51, %v176_v44  ;;  %v297_v23 = vadd.f32 %v293_v5, %v174_v24  ;;  %v298_v54 = vadd.f32 %v294_v52, %v175_v25  ;;  %v300_v56 = vadd.f32 %v296_v22, %v177_v21 }
 0x1f8   :  { %v314_v57 = vld [vmem:[#allocation2 + $0x11] ss:$2 sm:$0xff]  ;;  %v318_v40 = vld [vmem:[#allocation2 + $0x12] ss:$2 sm:$0xff] }
 0x1f9   :  { %v322_v59 = vld [vmem:[#allocation2 + $0x13] ss:$2 sm:$0xff]  ;;  %346 = vst.msk [vmem:[#allocation2 + $0x39] sm:$0xff] %vm178_vm1, %v299_v53  ;;  %v320_v62 = vld [vmem:[#allocation2 + $0x3] ss:$2 sm:$0xff]  ;;  %344 = vst.msk [vmem:[#allocation2 + $0x29] sm:$0xff] %vm178_vm1, %v297_v23 }
 0x1fa   :  { %v312_v60 = vld [vmem:[#allocation2 + $0x1] ss:$2 sm:$0xff]  ;;  %v1493_v61 = vpack.i.bf16 %v314_v57, %v322_v59  ;;  %345 = vst.msk [vmem:[#allocation2 + $0x31] sm:$0xff] %vm178_vm1, %v298_v54  ;;  %347 = vst.msk [vmem:[#allocation2 + $0x41] sm:$0xff] %vm178_vm1, %v300_v56  ;;  %v308_v63 = vld [vmem:[#allocation2] ss:$2 sm:$0xff] }
 0x1fb   :  { %612 = vst.msk [vmem:[#allocation2 + $0x11] sm:$0x1] %vm301_vm9, %v1568_v37  ;;  %v1488_v0 = vpack.i.bf16 %v312_v60, %v320_v62  ;;  %609 = vst.msk [vmem:[#allocation2] sm:$0x1] %vm301_vm9, %v1568_v37  ;;  %v316_v15 = vld [vmem:[#allocation2 + $0x2] ss:$2 sm:$0xff] }
 0x1fc   :  { %1494 = vrot.lane.b32.xlu1 %v1493_v61, %s1569_s28  ;;  %v310_v58 = vld [vmem:[#allocation2 + $0x10] ss:$2 sm:$0xff] }
 0x1fd   :  { %1489 = vrot.lane.b32.xlu0 %v1488_v0, %s1569_s28 }
 0x201   :  { %v354_v1 = vld [vmem:[#allocation2 + $0x29] ss:$2 sm:$0xff]  ;;  %v356_v3 = vld [vmem:[#allocation2 + $0x39] ss:$2 sm:$0xff]  ;;  %v350_v6 = vld [vmem:[#allocation2 + $0x28] ss:$2 sm:$0xff] }
 0x202   :  { %v362_v2 = vld [vmem:[#allocation2 + $0x2b] ss:$2 sm:$0xff]  ;;  %v364_v7 = vld [vmem:[#allocation2 + $0x3b] ss:$2 sm:$0xff]  ;;  %627 = vst.msk [vmem:[#allocation2 + $0x28] sm:$0x1] %vm301_vm9, %v1568_v37 }
 0x203   :  { %v1498_v4 = vpack.i.bf16 %v354_v1, %v362_v2  ;;  %630 = vst.msk [vmem:[#allocation2 + $0x39] sm:$0x1] %vm301_vm9, %v1568_v37  ;;  %v1503_v8 = vpack.i.bf16 %v356_v3, %v364_v7  ;;  %v358_v24 = vld [vmem:[#allocation2 + $0x2a] ss:$2 sm:$0xff]  ;;  %v360_v30 = vld [vmem:[#allocation2 + $0x3a] ss:$2 sm:$0xff] }
 0x204   :  { %v352_v31 = vld [vmem:[#allocation2 + $0x38] ss:$2 sm:$0xff] }
 0x205   :  { %1499 = vrot.lane.b32.xlu1 %v1498_v4, %s1569_s28 }
 0x209   :  { %1504 = vrot.lane.b32.xlu1 %v1503_v8, %s1569_s28 }
 0x26e   :  { %v1495_v9 = vpop.permute.xlu1 %1494 }
 0x26f   :  { %v1490_v10 = vpop.permute.xlu0 %1489  ;;  %v1496_v12 = vunpack.i.l.bf16 %v1495_v9  ;;  %v1497_v18 = vunpack.i.h.bf16 %v1495_v9 }
 0x270   :  { %v1492_v13 = vunpack.i.h.bf16 %v1490_v10  ;;  %v1491_v14 = vunpack.i.l.bf16 %v1490_v10 }
 0x271   :  { %v342_v44 = vsel %vm178_vm1, %v318_v40, %v1496_v12  ;;  %v340_v21 = vsel %vm178_vm1, %v310_v58, %v1497_v18  ;;  %v646_v18 = vld [vmem:[%s2217_s1 + $0x1f8] sm:$0xff]  ;;  %v663_v40 = vld [vmem:[%s2217_s1 + $0x280] sm:$0xff] }
 0x272   :  { %v341_v16 = vsel %vm178_vm1, %v316_v15, %v1491_v14  ;;  %v339_v17 = vsel %vm178_vm1, %v308_v63, %v1492_v13  ;;  %v661_v14 = vld [vmem:[%s2217_s1 + $0x270] sm:$0xff]  ;;  %v662_v15 = vld [vmem:[%s2217_s1 + $0x278] sm:$0xff] }
 0x273   :  { %486 = vmatprep.mubr.f32.mxu1 %v341_v16  ;;  %v645_v16 = vld [vmem:[%s2217_s1 + $0x1f0] sm:$0xff] }
 0x274   :  { %487 = vmatmul.mubr.f32.vlgmr.msra.gmra.mrb[0].mxu1 %v339_v17  ;;  %v1384_v17 = vpack.c.bf16 %v662_v15, %v661_v14 }
 0x275   :  { %491 = vmatprep.mubr.f32.mxu1 %v342_v44  ;;  %v664_v44 = vld [vmem:[%s2217_s1 + $0x288] sm:$0xff] }
 0x276   :  { %v1388_v58 = vpack.c.bf16 %v664_v44, %v663_v40  ;;  %1385 = vmatprep.subr.bf16.mxu0 %v1384_v17 }
 0x277   :  { %v1500_v55 = vpop.permute.xlu1 %1499 }
 0x278   :  { %v1502_v19 = vunpack.i.h.bf16 %v1500_v55  ;;  %v1501_v20 = vunpack.i.l.bf16 %v1500_v55  ;;  %492 = vmatmul.mubr.f32.gmra.mrb[2].mxu1 %v340_v21  ;;  %v1386_v55 = vpack.c.bf16 %v646_v18, %v645_v16  ;;  %v665_v21 = vld [vmem:[%s2217_s1 + $0x290] sm:$0xff] }
 0x27a   :  { %v383_v25 = vsel %vm178_vm1, %v358_v24, %v1501_v20  ;;  %v381_v26 = vsel %vm178_vm1, %v350_v6, %v1502_v19  ;;  %v647_v19 = vld [vmem:[%s2217_s1 + $0x200] sm:$0xff]  ;;  %v648_v20 = vld [vmem:[%s2217_s1 + $0x208] sm:$0xff]  ;;  %v666_v24 = vld [vmem:[%s2217_s1 + $0x298] sm:$0xff]  ;;  %1387 = vmatpush3.bf16.msra.mxu0 %v1386_v55 }
 0x27b   :  { %v1505_v27 = vpop.permute.xlu1 %1504  ;;  %496 = vmatprep.mubr.f32.mxu1 %v383_v25  ;;  %v1390_v25 = vpack.c.bf16 %v648_v20, %v647_v19  ;;  %1389 = vmatprep.subr.bf16.mxu0 %v1388_v58 }
 0x27c   :  { %v1507_v28 = vunpack.i.h.bf16 %v1505_v27  ;;  %v1506_v29 = vunpack.i.l.bf16 %v1505_v27  ;;  %497 = vmatmul.mubr.f32.gmra.mrb[4].mxu1 %v381_v26  ;;  %v1392_v26 = vpack.c.bf16 %v666_v24, %v665_v21  ;;  %v649_v27 = vld [vmem:[%s2217_s1 + $0x210] sm:$0xff] }
 0x27e   :  { %v384_v32 = vsel %vm178_vm1, %v360_v30, %v1506_v29  ;;  %v382_v33 = vsel %vm178_vm1, %v352_v31, %v1507_v28  ;;  %v650_v28 = vld [vmem:[%s2217_s1 + $0x218] sm:$0xff]  ;;  %v667_v29 = vld [vmem:[%s2217_s1 + $0x2a0] sm:$0xff]  ;;  %v668_v30 = vld [vmem:[%s2217_s1 + $0x2a8] sm:$0xff]  ;;  %1391 = vmatpush3.bf16.msra.mxu0 %v1390_v25 }
 0x27f   :  { %501 = vmatprep.mubr.f32.mxu1 %v384_v32  ;;  %v1394_v31 = vpack.c.bf16 %v650_v28, %v649_v27  ;;  %1393 = vmatprep.subr.bf16.mxu0 %v1392_v26  ;;  %v1396_v32 = vpack.c.bf16 %v668_v30, %v667_v29 }
 0x280   :  { %502 = vmatmul.mubr.f32.gmra.mrb[6].mxu1 %v382_v33  ;;  %v651_v33 = vld [vmem:[%s2217_s1 + $0x220] sm:$0xff] }
 0x282   :  { %1395 = vmatpush3.bf16.msra.mxu0 %v1394_v31 }
 0x283   :  { %1397 = vmatprep.subr.bf16.mxu0 %v1396_v32 }
 0x347   :  { %v1191_v34 = vpop.f32.mrb[0].mxu1 }
 0x348   :  { %v1192_v36 = vpop.f32.mrb[1].mxu1 }
 0x349   :  { %v1193_v38 = vadd.f32 %v1192_v36, %v1191_v34  ;;  %v652_v34 = vld [vmem:[%s2217_s1 + $0x228] sm:$0xff]  ;;  %v670_v36 = vld [vmem:[%s2217_s1 + $0x2b8] sm:$0xff] }
 0x34b   :  { %v489_v39 = vadd.f32 %v1193_v38, %v1132_v35  ;;  %v1194_v41 = vpop.f32.mrb[2].mxu1  ;;  %v1398_v38 = vpack.c.bf16 %v652_v34, %v651_v33 }
 0x34c   :  { %v1195_v42 = vpop.f32.mrb[3].mxu1 }
 0x34d   :  { %v511_v43 = vmul.f32 0.01, %v489_v39  ;;  %v1196_v45 = vadd.f32 %v1195_v42, %v1194_v41  ;;  %vm507_vm10 = vcmp.ge.f32.partialorder %v489_v39, 0.0  ;;  %v653_v41 = vld [vmem:[%s2217_s1 + $0x230] sm:$0xff]  ;;  %v654_v42 = vld [vmem:[%s2217_s1 + $0x238] sm:$0xff]  ;;  %1399 = vmatpush3.bf16.msra.mxu0 %v1398_v38 }
 0x34f   :  { %v494_v46 = vadd.f32 %v1196_v45, %v1132_v35  ;;  %v1197_v47 = vpop.f32.mrb[4].mxu1  ;;  %v1885_v48 = vsel %vm507_vm10, %v489_v39, %v511_v43  ;;  %v671_v43 = vld [vmem:[%s2217_s1 + $0x2c0] sm:$0xff]  ;;  %v672_v45 = vld [vmem:[%s2217_s1 + $0x2c8] sm:$0xff] }
 0x350   :  { %v1198_v49 = vpop.f32.mrb[5].mxu1  ;;  %v536_v51 = vmul.f32 %v1885_v48, %v1885_v48  ;;  %v523_v23 = vsel %vm178_vm1, %v1885_v48, 0.0 }
 0x351   :  { %v512_v50 = vmul.f32 0.01, %v494_v46  ;;  %v1199_v11 = vadd.f32 %v1198_v49, %v1197_v47  ;;  %vm508_vm11 = vcmp.ge.f32.partialorder %v494_v46, 0.0  ;;  %v1404_v49 = vpack.c.bf16 %v672_v45, %v671_v43  ;;  %v519_v45 = vld [vmem:[%s2217_s1 + $0x1d0] sm:$0xff] }
 0x352   :  { %v538_v61 = vsel %vm178_vm1, %v536_v51, 0.0 }
 0x353   :  { %v499_v5 = vadd.f32 %v1199_v11, %v1132_v35  ;;  %v1200_v52 = vpop.f32.mrb[6].mxu1  ;;  %v1889_v22 = vsel %vm508_vm11, %v494_v46, %v512_v50  ;;  %v1402_v46 = vpack.c.bf16 %v654_v42, %v653_v41  ;;  %v655_v50 = vld [vmem:[%s2217_s1 + $0x240] sm:$0xff]  ;;  %v656_v11 = vld [vmem:[%s2217_s1 + $0x248] sm:$0xff] }
 0x354   :  { %v1201_v53 = vpop.f32.mrb[7].mxu1  ;;  %v524_v54 = vsel %vm178_vm1, %v1889_v22, 0.0  ;;  %v537_v56 = vmul.f32 %v1889_v22, %v1889_v22 }
 0x355   :  { %v513_v57 = vmul.f32 0.01, %v499_v5  ;;  %v1202_v59 = vadd.f32 %v1201_v53, %v1200_v52  ;;  %v525_v60 = vadd.f32 %v524_v54, %v523_v23  ;;  %vm509_vm12 = vcmp.ge.f32.partialorder %v499_v5, 0.0  ;;  %v674_v52 = vld [vmem:[%s2217_s1 + $0x2d8] sm:$0xff] }
 0x356   :  { %v539_v62 = vsel %vm178_vm1, %v537_v56, 0.0  ;;  %v1406_v56 = vpack.c.bf16 %v656_v11, %v655_v50  ;;  %v676_v11 = vld [vmem:[%s2217_s1 + $0x2e8] sm:$0xff] }
 0x357   :  { %v504_v63 = vadd.f32 %v1202_v59, %v1132_v35  ;;  %526 = vadd.xlane.f32.xlu0 %v525_v60  ;;  %v540_v0 = vadd.f32 %v539_v62, %v538_v61  ;;  %v1899_v2 = vsel %vm509_vm12, %v499_v5, %v513_v57  ;;  %v669_v35 = vld [vmem:[%s2217_s1 + $0x2b0] sm:$0xff]  ;;  %v658_v60 = vld [vmem:[%s2217_s1 + $0x258] sm:$0xff] }
 0x358   :  { %v566_v4 = vsel %vm178_vm1, %v1899_v2, 0.0  ;;  %v579_v7 = vmul.f32 %v1899_v2, %v1899_v2  ;;  %v1400_v39 = vpack.c.bf16 %v670_v36, %v669_v35  ;;  %v673_v5 = vld [vmem:[%s2217_s1 + $0x2d0] sm:$0xff] }
 0x359   :  { %v514_v1 = vmul.f32 0.01, %v504_v63  ;;  %541 = vadd.xlane.f32.xlu1 %v540_v0  ;;  %vm510_vm13 = vcmp.ge.f32.partialorder %v504_v63, 0.0  ;;  %v1408_v57 = vpack.c.bf16 %v674_v52, %v673_v5  ;;  %v657_v59 = vld [vmem:[%s2217_s1 + $0x250] sm:$0xff] }
 0x35a   :  { %v581_v12 = vsel %vm178_vm1, %v579_v7, 0.0  ;;  %1401 = vmatprep.subr.bf16.mxu0 %v1400_v39 }
 0x35b   :  { %v1901_v3 = vsel %vm510_vm13, %v504_v63, %v514_v1  ;;  %1403 = vmatpush3.bf16.msra.mxu0 %v1402_v46  ;;  %v1410_v1 = vpack.c.bf16 %v658_v60, %v657_v59  ;;  %v520_v46 = vld [vmem:[%s2217_s1 + $0x1d8] sm:$0xff] }
 0x35c   :  { %v567_v6 = vsel %vm178_vm1, %v1901_v3, 0.0  ;;  %v580_v8 = vmul.f32 %v1901_v3, %v1901_v3  ;;  %1405 = vmatprep.subr.bf16.mxu0 %v1404_v49 }
 0x35d   :  { %v568_v9 = vadd.f32 %v567_v6, %v566_v4 }
 0x35e   :  { %v582_v10 = vsel %vm178_vm1, %v580_v8, 0.0 }
 0x35f   :  { %569 = vadd.xlane.f32.xlu0 %v568_v9  ;;  %v583_v13 = vadd.f32 %v582_v10, %v581_v12  ;;  %1407 = vmatpush3.bf16.msra.mxu0 %v1406_v56 }
 0x360   :  { %1409 = vmatprep.subr.bf16.mxu0 %v1408_v57 }
 0x363   :  { %584 = vadd.xlane.f32.xlu0 %v583_v13  ;;  %1411 = vmatpush3.bf16.msra.mxu0 %v1410_v1 }
 0x3e4   :  { %v527_v47 = vpop.xlane.xlu0 %526 }
 0x3e5   :  { %v528_v51 = vrot.slane %v527_v47, 4 }
 0x3e6   :  { %v542_v53 = vpop.xlane.xlu1 %541 }
 0x3e7   :  { %v529_v23 = vadd.f32 %v528_v51, %v527_v47  ;;  %v543_v54 = vrot.slane %v542_v53, 4  ;;  %v521_v47 = vld [vmem:[%s2217_s1 + $0x1e0] sm:$0xff] }
 0x3e9   :  { %v530_v61 = vrot.slane %v529_v23, 2  ;;  %v544_v62 = vadd.f32 %v543_v54, %v542_v53  ;;  %v659_v53 = vld [vmem:[%s2217_s1 + $0x260] sm:$0xff] }
 0x3eb   :  { %v545_v63 = vrot.slane %v544_v62, 2  ;;  %v531_v0 = vadd.f32 %v530_v61, %v529_v23  ;;  %v660_v23 = vld [vmem:[%s2217_s1 + $0x268] sm:$0xff] }
 0x3ec   :  { %v570_v4 = vpop.xlane.xlu0 %569  ;;  %v1414_v54 = vpack.c.bf16 %v660_v23, %v659_v53  ;;  %v896_v53 = vld [vmem:[%s2217_s1 + $0x3a8] sm:$0xff]  ;;  %v897_v23 = vld [vmem:[%s2217_s1 + $0x3b0] sm:$0xff] }
 0x3ed   :  { %v571_v6 = vrot.slane %v570_v4, 4  ;;  %v532_v7 = vrot.slane %v531_v0, 1  ;;  %v546_v8 = vadd.f32 %v545_v63, %v544_v62 }
 0x3ef   :  { %v572_v9 = vadd.f32 %v571_v6, %v570_v4  ;;  %v533_v10 = vadd.f32 %v532_v7, %v531_v0  ;;  %v547_v12 = vrot.slane %v546_v8, 1 }
 0x3f0   :  { %v585_v13 = vpop.xlane.xlu0 %584 }
 0x3f1   :  { %v573_v14 = vrot.slane %v572_v9, 2  ;;  %v586_v15 = vrot.slane %v585_v13, 4  ;;  %1456 = vpush %v533_v10  ;;  %v548_v16 = vadd.f32 %v547_v12, %v546_v8 }
 0x3f3   :  { %v587_v17 = vadd.f32 %v586_v15, %v585_v13  ;;  %1458 = vpush %v548_v16  ;;  %v574_v18 = vadd.f32 %v573_v14, %v572_v9 }
 0x3f5   :  { %v588_v40 = vrot.slane %v587_v17, 2  ;;  %v575_v44 = vrot.slane %v574_v18, 1 }
 0x3f7   :  { %v576_v55 = vadd.f32 %v575_v44, %v574_v18  ;;  %v589_v58 = vadd.f32 %v588_v40, %v587_v17 }
 0x3f9   :  { %1460 = vpush %v576_v55  ;;  %v590_v19 = vrot.slane %v589_v58, 1 }
 0x3fb   :  { %v591_v20 = vadd.f32 %v590_v19, %v589_v58 }
 0x3fd   :  { %1462 = vpush %v591_v20 }
 0x422   :  { %s1457_s0 = spop %1456 }
 0x423   :  { %v535_v21 = vstv %s1457_s0 }
 0x424   :  { %v551_v24 = vmul.f32 0.0009765625, %v535_v21  ;;  %s1459_s3 = spop %1458 }
 0x425   :  { %v550_v25 = vstv %s1459_s3 }
 0x426   :  { %v552_v26 = vmul.f32 0.0009765625, %v550_v25  ;;  %v553_v27 = vmul.f32 %v551_v24, %v551_v24  ;;  %v556_v41 = vsub.f32 %v1885_v48, %v551_v24  ;;  %v557_v42 = vsub.f32 %v1889_v22, %v551_v24  ;;  %v522_v48 = vld [vmem:[%s2217_s1 + $0x1e8] sm:$0xff]  ;;  %v675_v22 = vld [vmem:[%s2217_s1 + $0x2e0] sm:$0xff]  ;;  %v1133_v24 = vld [vmem:[%s2217_s1 + $0x2f0] ss:$0 sm:$0xff] }
 0x427   :  { %v1412_v52 = vpack.c.bf16 %v676_v11, %v675_v22  ;;  %v895_v22 = vld [vmem:[%s2217_s1 + $0x3a0] sm:$0xff] }
 0x428   :  { %v554_v28 = vsub.f32 %v552_v26, %v553_v27 }
 0x429   :  { %1413 = vmatprep.subr.bf16.mxu0 %v1412_v52  ;;  %v879_v52 = vld [vmem:[%s2217_s1 + $0x320] sm:$0xff] }
 0x42a   :  { %v555_v29 = vmax.f32 %v554_v28, 0.0  ;;  %s1461_s4 = spop %1460  ;;  %1415 = vmatpush3.bf16.msra.mxu0 %v1414_v54 }
 0x42b   :  { %v578_v30 = vstv %s1461_s4 }
 0x42c   :  { %v558_v31 = vadd.f32 1e-05, %v555_v29  ;;  %v594_v32 = vmul.f32 0.0009765625, %v578_v30 }
 0x42e   :  { %1532 = vrsqrt.f32 %v558_v31  ;;  %s1463_s5 = spop %1462  ;;  %v596_v35 = vmul.f32 %v594_v32, %v594_v32  ;;  %v599_v59 = vsub.f32 %v1899_v2, %v594_v32  ;;  %v600_v60 = vsub.f32 %v1901_v3, %v594_v32 }
 0x42f   :  { %v593_v33 = vstv %s1463_s5 }
 0x430   :  { %v595_v34 = vmul.f32 0.0009765625, %v593_v33 }
 0x432   :  { %v597_v36 = vsub.f32 %v595_v34, %v596_v35 }
 0x434   :  { %v598_v38 = vmax.f32 %v597_v36, 0.0 }
 0x436   :  { %v601_v39 = vadd.f32 1e-05, %v598_v38 }
 0x438   :  { %v1533_v43 = vpop.eup %1532  ;;  %1534 = vrsqrt.f32 %v601_v39 }
 0x439   :  { %v560_v49 = vmul.f32 %v1533_v43, %v556_v41  ;;  %v561_v50 = vmul.f32 %v1533_v43, %v557_v42 }
 0x43b   :  { %v562_v51 = vmul.f32 %v560_v49, %v519_v45  ;;  %v563_v5 = vmul.f32 %v561_v50, %v520_v46  ;;  %v877_v50 = vld [vmem:[%s2217_s1 + $0x310] sm:$0xff] }
 0x43d   :  { %v564_v56 = vadd.f32 %v562_v51, %v521_v47  ;;  %v565_v57 = vadd.f32 %v563_v5, %v522_v48  ;;  %v878_v5 = vld [vmem:[%s2217_s1 + $0x318] sm:$0xff] }
 0x43e   :  { %v1422_v54 = vpack.c.bf16 %v879_v52, %v878_v5  ;;  %v764_v52 = vld [vmem:[%s2217_s1 + $0x300] sm:$0xff] }
 0x43f   :  { %610 = vst.msk [vmem:[#allocation2 + $0x1] sm:$0xff] %vm178_vm1, %v564_v56  ;;  %611 = vst.msk [vmem:[#allocation2 + $0x9] sm:$0xff] %vm178_vm1, %v565_v57  ;;  %v1424_v56 = vpack.c.bf16 %v897_v23, %v896_v53  ;;  %v880_v57 = vld [vmem:[%s2217_s1 + $0x328] sm:$0xff] }
 0x440   :  { %v900_v23 = vld [vmem:[%s2217_s1 + $0x3c8] sm:$0xff] }
 0x442   :  { %v1535_v61 = vpop.eup %1534 }
 0x443   :  { %v603_v62 = vmul.f32 %v1535_v61, %v599_v59  ;;  %v604_v63 = vmul.f32 %v1535_v61, %v600_v60  ;;  %v881_v59 = vld [vmem:[%s2217_s1 + $0x330] sm:$0xff]  ;;  %v898_v60 = vld [vmem:[%s2217_s1 + $0x3b8] sm:$0xff]  ;;  %v899_v61 = vld [vmem:[%s2217_s1 + $0x3c0] sm:$0xff] }
 0x445   :  { %v605_v0 = vmul.f32 %v603_v62, %v519_v45  ;;  %v606_v1 = vmul.f32 %v604_v63, %v520_v46  ;;  %v892_v45 = vld [vmem:[%s2217_s1 + $0x388] sm:$0xff]  ;;  %v893_v46 = vld [vmem:[%s2217_s1 + $0x390] sm:$0xff]  ;;  %v1426_v62 = vpack.c.bf16 %v881_v59, %v880_v57  ;;  %v1428_v63 = vpack.c.bf16 %v899_v61, %v898_v60  ;;  %v902_v61 = vld [vmem:[%s2217_s1 + $0x3d8] sm:$0xff] }
 0x446   :  { %v614_v4 = vld [vmem:[#allocation2 + $0x1] ss:$2 sm:$0xff]  ;;  %v613_v10 = vld [vmem:[#allocation2] ss:$2 sm:$0xff]  ;;  %v1416_v49 = vpack.c.bf16 %v893_v46, %v892_v45  ;;  %v885_v57 = vld [vmem:[%s2217_s1 + $0x350] sm:$0xff] }
 0x447   :  { %v616_v6 = vld [vmem:[#allocation2 + $0x3] ss:$2 sm:$0xff]  ;;  %v607_v7 = vadd.f32 %v605_v0, %v521_v47  ;;  %v608_v8 = vadd.f32 %v606_v1, %v522_v48  ;;  %833 = vst.msk [vmem:[#allocation2] sm:$0x1] %vm301_vm9, %v1568_v37  ;;  %v615_v17 = vld [vmem:[#allocation2 + $0x2] ss:$2 sm:$0xff] }
 0x448   :  { %v1508_v9 = vpack.i.bf16 %v614_v4, %v616_v6  ;;  %835 = vst.msk [vmem:[#allocation2 + $0x9] sm:$0x1] %vm301_vm9, %v1568_v37  ;;  %v876_v47 = vld [vmem:[%s2217_s1 + $0x308] sm:$0xff]  ;;  %v894_v48 = vld [vmem:[%s2217_s1 + $0x398] sm:$0xff]  ;;  %1417 = vmatprep.subr.bf16.mxu1 %v1416_v49  ;;  %v883_v1 = vld [vmem:[%s2217_s1 + $0x340] sm:$0xff] }
 0x449   :  { %628 = vst.msk [vmem:[#allocation2 + $0x29] sm:$0xff] %vm178_vm1, %v607_v7  ;;  %629 = vst.msk [vmem:[#allocation2 + $0x31] sm:$0xff] %vm178_vm1, %v608_v8  ;;  %v1418_v11 = vpack.c.bf16 %v877_v50, %v876_v47  ;;  %v1420_v51 = vpack.c.bf16 %v895_v22, %v894_v48  ;;  %v882_v0 = vld [vmem:[%s2217_s1 + $0x338] sm:$0xff] }
 0x44a   :  { %1509 = vrot.lane.b32.xlu0 %v1508_v9, %s1569_s28  ;;  %v1430_v4 = vpack.c.bf16 %v883_v1, %v882_v0  ;;  %v887_v1 = vld [vmem:[%s2217_s1 + $0x360] sm:$0xff] }
 0x44b   :  { %1419 = vmatpush3.bf16.msra.mxu1 %v1418_v11 }
 0x44c   :  { %1421 = vmatprep.subr.bf16.mxu1 %v1420_v51  ;;  %v763_v51 = vld [vmem:[%s2217_s1 + $0x2f8] sm:$0xff] }
 0x44f   :  { %1423 = vmatpush3.bf16.msra.mxu1 %v1422_v54 }
 0x450   :  { %v632_v2 = vld [vmem:[#allocation2 + $0x29] ss:$2 sm:$0xff]  ;;  %v631_v13 = vld [vmem:[#allocation2 + $0x28] ss:$2 sm:$0xff]  ;;  %1425 = vmatprep.subr.bf16.mxu1 %v1424_v56 }
 0x451   :  { %v634_v3 = vld [vmem:[#allocation2 + $0x2b] ss:$2 sm:$0xff]  ;;  %850 = vst.msk [vmem:[#allocation2 + $0x28] sm:$0x1] %vm301_vm9, %v1568_v37  ;;  %v633_v19 = vld [vmem:[#allocation2 + $0x2a] ss:$2 sm:$0xff] }
 0x452   :  { %v1513_v12 = vpack.i.bf16 %v632_v2, %v634_v3  ;;  %852 = vst.msk [vmem:[#allocation2 + $0x31] sm:$0x1] %vm301_vm9, %v1568_v37  ;;  %v884_v56 = vld [vmem:[%s2217_s1 + $0x348] sm:$0xff] }
 0x453   :  { %1427 = vmatpush3.bf16.msra.mxu1 %v1426_v62  ;;  %v1434_v60 = vpack.c.bf16 %v885_v57, %v884_v56  ;;  %v903_v62 = vld [vmem:[%s2217_s1 + $0x3e0] sm:$0xff] }
 0x454   :  { %1514 = vrot.lane.b32.xlu1 %v1513_v12, %s1569_s28  ;;  %1429 = vmatprep.subr.bf16.mxu1 %v1428_v63  ;;  %v886_v63 = vld [vmem:[%s2217_s1 + $0x358] sm:$0xff]  ;;  %v1436_v0 = vpack.c.bf16 %v903_v62, %v902_v61 }
 0x457   :  { %1431 = vmatpush3.bf16.msra.mxu1 %v1430_v4  ;;  %v904_v4 = vld [vmem:[%s2217_s1 + $0x3e8] sm:$0xff] }
 0x4bc   :  { %v1510_v14 = vpop.permute.xlu0 %1509 }
 0x4bd   :  { %v1512_v15 = vunpack.i.h.bf16 %v1510_v14  ;;  %v1511_v16 = vunpack.i.l.bf16 %v1510_v14 }
 0x4bf   :  { %v626_v18 = vsel %vm178_vm1, %v615_v17, %v1511_v16  ;;  %v625_v40 = vsel %vm178_vm1, %v613_v10, %v1512_v15 }
 0x4c0   :  { %746 = vmatprep.mubr.f32.mxu0 %v626_v18 }
 0x4c1   :  { %747 = vmatmul.mubr.f32.vlgmr.msra.gmra.mrb[8].mxu0 %v625_v40 }
 0x4c6   :  { %v1515_v44 = vpop.permute.xlu1 %1514 }
 0x4c7   :  { %v1517_v55 = vunpack.i.h.bf16 %v1515_v44  ;;  %v1516_v58 = vunpack.i.l.bf16 %v1515_v44 }
 0x4c9   :  { %v644_v20 = vsel %vm178_vm1, %v633_v19, %v1516_v58  ;;  %v643_v37 = vsel %vm178_vm1, %v631_v13, %v1517_v55 }
 0x4ca   :  { %751 = vmatprep.mubr.f32.mxu0 %v644_v20 }
 0x4cb   :  { %752 = vmatmul.mubr.f32.gmra.mrb[10].mxu0 %v643_v37 }
 0x594   :  { %v1235_v21 = vpop.f32.mrb[8].mxu0 }
 0x595   :  { %v1236_v25 = vpop.f32.mrb[9].mxu0 }
 0x596   :  { %v1237_v26 = vadd.f32 %v1236_v25, %v1235_v21 }
 0x598   :  { %v749_v27 = vadd.f32 %v1237_v26, %v1133_v24 }
 0x59a   :  { %v759_v28 = vmul.f32 0.01, %v749_v27  ;;  %vm757_vm14 = vcmp.ge.f32.partialorder %v749_v27, 0.0 }
 0x59c   :  { %v2046_v29 = vsel %vm757_vm14, %v749_v27, %v759_v28 }
 0x59d   :  { %v765_v30 = vsel %vm178_vm1, %v2046_v29, 0.0  ;;  %v776_v31 = vmul.f32 %v2046_v29, %v2046_v29 }
 0x59e   :  { %v1238_v32 = vpop.f32.mrb[10].mxu0  ;;  %766 = vadd.xlane.f32.xlu1 %v765_v30 }
 0x59f   :  { %v1239_v33 = vpop.f32.mrb[11].mxu0  ;;  %v777_v34 = vsel %vm178_vm1, %v776_v31, 0.0 }
 0x5a0   :  { %v1240_v35 = vadd.f32 %v1239_v33, %v1238_v32  ;;  %778 = vadd.xlane.f32.xlu0 %v777_v34 }
 0x5a2   :  { %v754_v36 = vadd.f32 %v1240_v35, %v1133_v24 }
 0x5a4   :  { %v760_v38 = vmul.f32 0.01, %v754_v36  ;;  %vm758_vm15 = vcmp.ge.f32.partialorder %v754_v36, 0.0 }
 0x5a6   :  { %v2053_v39 = vsel %vm758_vm15, %v754_v36, %v760_v38 }
 0x5a7   :  { %v799_v41 = vsel %vm178_vm1, %v2053_v39, 0.0  ;;  %v810_v42 = vmul.f32 %v2053_v39, %v2053_v39 }
 0x5a8   :  { %800 = vadd.xlane.f32.xlu0 %v799_v41 }
 0x5a9   :  { %v811_v43 = vsel %vm178_vm1, %v810_v42, 0.0 }
 0x5aa   :  { %812 = vadd.xlane.f32.xlu1 %v811_v43 }
 0x62b   :  { %v767_v6 = vpop.xlane.xlu1 %766 }
 0x62c   :  { %v768_v7 = vrot.slane %v767_v6, 4 }
 0x62d   :  { %v779_v8 = vpop.xlane.xlu0 %778 }
 0x62e   :  { %v769_v9 = vadd.f32 %v768_v7, %v767_v6  ;;  %v780_v10 = vrot.slane %v779_v8, 4  ;;  %v905_v6 = vld [vmem:[%s2217_s1 + $0x3f0] sm:$0xff]  ;;  %v1438_v7 = vpack.c.bf16 %v887_v1, %v886_v63 }
 0x630   :  { %v770_v2 = vrot.slane %v769_v9, 2  ;;  %v781_v3 = vadd.f32 %v780_v10, %v779_v8  ;;  %v1440_v8 = vpack.c.bf16 %v905_v6, %v904_v4 }
 0x632   :  { %v782_v12 = vrot.slane %v781_v3, 2  ;;  %v771_v13 = vadd.f32 %v770_v2, %v769_v9 }
 0x634   :  { %v772_v14 = vrot.slane %v771_v13, 1  ;;  %v783_v15 = vadd.f32 %v782_v12, %v781_v3  ;;  %v888_v3 = vld [vmem:[%s2217_s1 + $0x368] sm:$0xff]  ;;  %v889_v12 = vld [vmem:[%s2217_s1 + $0x370] sm:$0xff] }
 0x635   :  { %v801_v16 = vpop.xlane.xlu0 %800 }
 0x636   :  { %v802_v17 = vrot.slane %v801_v16, 4  ;;  %v773_v18 = vadd.f32 %v772_v14, %v771_v13  ;;  %v784_v40 = vrot.slane %v783_v15, 1  ;;  %v1442_v14 = vpack.c.bf16 %v889_v12, %v888_v3 }
 0x637   :  { %v813_v44 = vpop.xlane.xlu1 %812 }
 0x638   :  { %v803_v55 = vadd.f32 %v802_v17, %v801_v16  ;;  %v814_v58 = vrot.slane %v813_v44, 4  ;;  %1464 = vpush %v773_v18  ;;  %v785_v19 = vadd.f32 %v784_v40, %v783_v15  ;;  %v907_v40 = vld [vmem:[%s2217_s1 + $0x400] sm:$0xff] }
 0x63a   :  { %v804_v20 = vrot.slane %v803_v55, 2  ;;  %v815_v37 = vadd.f32 %v814_v58, %v813_v44  ;;  %1466 = vpush %v785_v19  ;;  %v891_v58 = vld [vmem:[%s2217_s1 + $0x380] sm:$0xff] }
 0x63c   :  { %v816_v21 = vrot.slane %v815_v37, 2  ;;  %v805_v24 = vadd.f32 %v804_v20, %v803_v55  ;;  %v890_v55 = vld [vmem:[%s2217_s1 + $0x378] sm:$0xff] }
 0x63d   :  { %v1446_v19 = vpack.c.bf16 %v891_v58, %v890_v55 }
 0x63e   :  { %v806_v25 = vrot.slane %v805_v24, 1  ;;  %v817_v26 = vadd.f32 %v816_v21, %v815_v37 }
 0x640   :  { %v807_v27 = vadd.f32 %v806_v25, %v805_v24  ;;  %v818_v28 = vrot.slane %v817_v26, 1 }
 0x642   :  { %1468 = vpush %v807_v27  ;;  %v819_v30 = vadd.f32 %v818_v28, %v817_v26 }
 0x644   :  { %1470 = vpush %v819_v30 }
 0x669   :  { %s1465_s29 = spop %1464 }
 0x66a   :  { %v775_v31 = vstv %s1465_s29  ;;  %s1571_s29 = smov [#allocation3]  }
 0x66b   :  { %v788_v32 = vmul.f32 0.001953125, %v775_v31  ;;  %s1467_s30 = spop %1466 }
 0x66c   :  { %v787_v33 = vstv %s1467_s30  ;;  %s1123_s30 = sshll.u32 %s1571_s29, 4  ;;  %s1124_s30 = int_to_ptr.vmem [resolvable:$true] %s1123_s30 }
 0x66d   :  { %v790_v34 = vmul.f32 %v788_v32, %v788_v32  ;;  %v789_v35 = vmul.f32 0.001953125, %v787_v33  ;;  %v793_v22 = vsub.f32 %v2046_v29, %v788_v32  ;;  %v901_v29 = vld [vmem:[%s2217_s1 + $0x3d0] sm:$0xff]  ;;  %p1549_p1 = scmp.lt.s32.totalorder %s1124_s30, %s1124_s30 }
 0x66e   :  { %v1432_v54 = vpack.c.bf16 %v901_v29, %v900_v23 }
 0x66f   :  { %v791_v36 = vsub.f32 %v789_v35, %v790_v34 }
 0x670   :  { %1433 = vmatprep.subr.bf16.mxu1 %v1432_v54 }
 0x671   :  { %v792_v38 = vmax.f32 %v791_v36, 0.0  ;;  %1435 = vmatpush3.bf16.msra.mxu1 %v1434_v60 }
 0x672   :  { %1437 = vmatprep.subr.bf16.mxu1 %v1436_v0 }
 0x673   :  { %v794_v41 = vadd.f32 1e-05, %v792_v38  ;;  %s1469_s0 = spop %1468 }
 0x674   :  { %v809_v42 = vstv %s1469_s0  ;;  %s1548_s0 = scalar_lea.vmem %s1124_s30, 32 }
 0x675   :  { %1536 = vrsqrt.f32 %v794_v41  ;;  %v822_v43 = vmul.f32 0.001953125, %v809_v42  ;;  %s1471_s3 = spop %1470  ;;  %1439 = vmatpush3.bf16.msra.mxu1 %v1438_v7 }
 0x676   :  { %v821_v45 = vstv %s1471_s3  ;;  %1441 = vmatprep.subr.bf16.mxu1 %v1440_v8 }
 0x677   :  { %v824_v46 = vmul.f32 %v822_v43, %v822_v43  ;;  %v823_v47 = vmul.f32 0.001953125, %v821_v45  ;;  %v827_v9 = vsub.f32 %v2053_v39, %v822_v43  ;;  %v906_v39 = vld [vmem:[%s2217_s1 + $0x3f8] sm:$0xff] }
 0x678   :  { %v1444_v44 = vpack.c.bf16 %v907_v40, %v906_v39 }
 0x679   :  { %v825_v49 = vsub.f32 %v823_v47, %v824_v46  ;;  %1443 = vmatpush3.bf16.msra.mxu1 %v1442_v14 }
 0x67a   :  { %1445 = vmatprep.subr.bf16.mxu1 %v1444_v44 }
 0x67b   :  { %v826_v50 = vmax.f32 %v825_v49, 0.0  ;;  %v1134_v49 = vld [vmem:[%s2217_s1 + $0x408] ss:$0 sm:$0xff] }
 0x67d   :  { %v828_v48 = vadd.f32 1e-05, %v826_v50  ;;  %1447 = vmatpush3.bf16.msra.mxu1 %v1446_v19 }
 0x67f   :  { %v1537_v11 = vpop.eup %1536  ;;  %1538 = vrsqrt.f32 %v828_v48 }
 0x680   :  { %v796_v5 = vmul.f32 %v1537_v11, %v793_v22 }
 0x682   :  { %v797_v53 = vmul.f32 %v796_v5, %v763_v51 }
 0x684   :  { %v798_v59 = vadd.f32 %v797_v53, %v764_v52 }
 0x686   :  { %834 = vst.msk [vmem:[#allocation2 + $0x1] sm:$0xff] %vm178_vm1, %v798_v59 }
 0x689   :  { %v1539_v10 = vpop.eup %1538 }
 0x68a   :  { %v830_v2 = vmul.f32 %v1539_v10, %v827_v9 }
 0x68c   :  { %v831_v13 = vmul.f32 %v830_v2, %v763_v51 }
 0x68d   :  { %v837_v15 = vld [vmem:[#allocation2 + $0x1] ss:$2 sm:$0xf]  ;;  %v836_v33 = vld [vmem:[#allocation2] ss:$2 sm:$0xf] }
 0x68e   :  { %v839_v16 = vld [vmem:[#allocation2 + $0x3] ss:$2 sm:$0xf]  ;;  %v832_v17 = vadd.f32 %v831_v13, %v764_v52  ;;  %v838_v38 = vld [vmem:[#allocation2 + $0x2] ss:$2 sm:$0xf] }
 0x68f   :  { %v1523_v18 = vpack.i.bf16 %v837_v15, %v839_v16 }
 0x690   :  { %851 = vst.msk [vmem:[#allocation2 + $0x29] sm:$0xff] %vm178_vm1, %v832_v17 }
 0x691   :  { %1524 = vrot.lane.b32.xlu1 %v1523_v18, %s1569_s28 }
 0x697   :  { %v854_v20 = vld [vmem:[#allocation2 + $0x29] ss:$2 sm:$0xf]  ;;  %v855_v31 = vld [vmem:[#allocation2 + $0x2a] ss:$2 sm:$0xf] }
 0x698   :  { %v856_v37 = vld [vmem:[#allocation2 + $0x2b] ss:$2 sm:$0xf]  ;;  %v853_v32 = vld [vmem:[#allocation2 + $0x28] ss:$2 sm:$0xf] }
 0x699   :  { %v1518_v21 = vpack.i.bf16 %v854_v20, %v856_v37 }
 0x69b   :  { %1519 = vrot.lane.b32.xlu0 %v1518_v21, %s1569_s28 }
 0x703   :  { %v1525_v24 = vpop.permute.xlu1 %1524 }
 0x704   :  { %v1527_v26 = vunpack.i.h.bf16 %v1525_v24  ;;  %v1526_v27 = vunpack.i.l.bf16 %v1525_v24 }
 0x706   :  { %v848_v42 = vsel %vm178_vm1, %v836_v33, %v1527_v26  ;;  %v849_v43 = vsel %vm178_vm1, %v838_v38, %v1526_v27 }
 0x70d   :  { %v1520_v25 = vpop.permute.xlu0 %1519 }
 0x70e   :  { %v1522_v28 = vunpack.i.h.bf16 %v1520_v25  ;;  %v1521_v30 = vunpack.i.l.bf16 %v1520_v25 }
 0x710   :  { %v865_v34 = vsel %vm178_vm1, %v853_v32, %v1522_v28  ;;  %v866_v35 = vsel %vm178_vm1, %v855_v31, %v1521_v30 }
 0x711   :  { %v869_v36 = vrot.slane %v865_v34, 4  ;;  %v870_v41 = vrot.slane %v866_v35, 4 }
 0x713   :  { %v875_v45 = vsel %vm873_vm0, %v849_v43, %v870_v41  ;;  %v874_v46 = vsel %vm873_vm0, %v848_v42, %v869_v36  ;;  %v986_v43 = vld [vmem:[%s2217_s1 + $0x410] sm:$0xf] }
 0x714   :  { %977 = vmatprep.mubr.f32.mxu1 %v875_v45 }
 0x715   :  { %978 = vmatmul.mubr.f32.vlgmr.msra.gmra.mrb[8].mxu1 %v874_v46  ;;  %v1061_v46 = vrot.slane %v986_v43, 4 }
 0x7e8   :  { %v1273_v47 = vpop.f32.mrb[8].mxu1 }
 0x7e9   :  { %v1274_v50 = vpop.f32.mrb[9].mxu1 }
 0x7ea   :  { %v1275_v48 = vadd.f32 %v1274_v50, %v1273_v47 }
 0x7ec   :  { %v980_v22 = vadd.f32 %v1275_v48, %v1134_v49  ;;  %v987_v49 = vld [vmem:[%s2217_s1 + $0x418] sm:$0xf] }
 0x7ee   :  { %vm983_vm2 = vcmp.ge.f32.partialorder %v980_v22, 0.0  ;;  %v984_v11 = vmul.f32 0.01, %v980_v22 }
 0x7f0   :  { %v2177_v51 = vsel %vm983_vm2, %v980_v22, %v984_v11  ;;  %v1065_v22 = vrot.slane %v987_v49, 4  ;;  %v1069_v11 = vld [vmem:[%s2217_s1 + $0x420] sm:$0xf] }
 0x7f1   :  { %v989_v5 = vsel %vm988_vm3, %v2177_v51, 0.0  ;;  %v1000_v52 = vmul.f32 %v2177_v51, %v2177_v51  ;;  %v1024_v29 = vrot.slane %v2177_v51, 4 }
 0x7f2   :  { %990 = vadd.xlane.f32.xlu1 %v989_v5 }
 0x7f3   :  { %v1001_v53 = vsel %vm988_vm3, %v1000_v52, 0.0  ;;  %v1038_v23 = vrot.slane %v1000_v52, 4  ;;  %v1026_v56 = vsel %vm988_vm3, %v1024_v29, 0.0  ;;  %v1088_v52 = vrot.slane %v1069_v11, 4 }
 0x7f4   :  { %1002 = vadd.xlane.f32.xlu0 %v1001_v53 }
 0x7f5   :  { %v1040_v54 = vsel %vm988_vm3, %v1038_v23, 0.0 }
 0x7f6   :  { %1041 = vadd.xlane.f32.xlu1 %v1040_v54 }
 0x7f8   :  { %1027 = vadd.xlane.f32.xlu0 %v1026_v56 }
 0x87f   :  { %v991_v57 = vpop.xlane.xlu1 %990 }
 0x880   :  { %v992_v59 = vrot.slane %v991_v57, 4 }
 0x881   :  { %v1003_v60 = vpop.xlane.xlu0 %1002 }
 0x882   :  { %v993_v61 = vadd.f32 %v992_v59, %v991_v57  ;;  %v1004_v62 = vrot.slane %v1003_v60, 4 }
 0x883   :  { %v1042_v63 = vpop.xlane.xlu1 %1041 }
 0x884   :  { %v994_v0 = vrot.slane %v993_v61, 2  ;;  %v1005_v1 = vadd.f32 %v1004_v62, %v1003_v60  ;;  %v1043_v4 = vrot.slane %v1042_v63, 4 }
 0x885   :  { %v1028_v6 = vpop.xlane.xlu0 %1027 }
 0x886   :  { %v1006_v7 = vrot.slane %v1005_v1, 2  ;;  %v1044_v8 = vadd.f32 %v1043_v4, %v1042_v63  ;;  %v1029_v9 = vrot.slane %v1028_v6, 4  ;;  %v995_v10 = vadd.f32 %v994_v0, %v993_v61 }
 0x888   :  { %v1045_v2 = vrot.slane %v1044_v8, 2  ;;  %v1030_v3 = vadd.f32 %v1029_v9, %v1028_v6  ;;  %v996_v12 = vrot.slane %v995_v10, 1  ;;  %v1007_v13 = vadd.f32 %v1006_v7, %v1005_v1 }
 0x88a   :  { %v1031_v14 = vrot.slane %v1030_v3, 2  ;;  %v997_v15 = vadd.f32 %v996_v12, %v995_v10  ;;  %v1008_v16 = vrot.slane %v1007_v13, 1  ;;  %v1046_v17 = vadd.f32 %v1045_v2, %v1044_v8  ;;  %v1070_v12 = vld [vmem:[%s2217_s1 + $0x428] sm:$0x1]  ;;  %s1544_s1 = scalar_lea.vmem %s1124_s30, 16 }
 0x88b   :  { %p1545_p0 = scmp.ne.s32.totalorder %s1124_s30, %s1544_s1  ;;  %p1550_p2 = scmp.lt.s32.totalorder %s1548_s0, %s1544_s1 }
 0x88c   :  { %1472 = vpush %v997_v15  ;;  %v1009_v18 = vadd.f32 %v1008_v16, %v1007_v13  ;;  %v1032_v39 = vadd.f32 %v1031_v14, %v1030_v3  ;;  %v1047_v40 = vrot.slane %v1046_v17, 1 }
 0x88d   :  { %p1551_p3 = por %p1550_p2, %p1549_p1 }
 0x88e   :  { %1474 = vpush %v1009_v18  ;;  %v1033_v44 = vrot.slane %v1032_v39, 1  ;;  %v1048_v58 = vadd.f32 %v1047_v40, %v1046_v17 }
 0x88f   :  { %p1552_p4 = pnand %p1551_p3, %p1545_p0 }
 0x890   :  { %v1034_v55 = vadd.f32 %v1033_v44, %v1032_v39 }
 0x892   :  { %1476 = vpush %v1034_v55 }
 0x893   :  { %1478 = vpush %v1048_v58 }
 0x8bd   :  { %s1473_s13 = spop %1472 }
 0x8be   :  { %v999_v19 = vstv %s1473_s13 }
 0x8bf   :  { %v1012_v20 = vmul.f32 0.00390625, %v999_v19  ;;  %s1475_s14 = spop %1474 }
 0x8c0   :  { %v1011_v37 = vstv %s1475_s14 }
 0x8c1   :  { %v1014_v21 = vmul.f32 %v1012_v20, %v1012_v20  ;;  %v1013_v24 = vmul.f32 0.00390625, %v1011_v37  ;;  %v1017_v41 = vsub.f32 %v2177_v51, %v1012_v20 }
 0x8c3   :  { %v1015_v25 = vsub.f32 %v1013_v24, %v1014_v21  ;;  %s1477_s15 = spop %1476 }
 0x8c4   :  { %v1036_v26 = vstv %s1477_s15  ;;  %s1479_s16 = spop %1478 }
 0x8c5   :  { %v1016_v27 = vmax.f32 %v1015_v25, 0.0  ;;  %v1051_v28 = vmul.f32 0.00390625, %v1036_v26  ;;  %v1050_v30 = vstv %s1479_s16 }
 0x8c6   :  { %v1052_v33 = vmul.f32 0.00390625, %v1050_v30 }
 0x8c7   :  { %v1018_v31 = vadd.f32 1e-05, %v1016_v27  ;;  %v1053_v32 = vmul.f32 %v1051_v28, %v1051_v28  ;;  %v1056_v45 = vsub.f32 %v2177_v51, %v1051_v28 }
 0x8c9   :  { %1540 = vrsqrt.f32 %v1018_v31  ;;  %v1054_v34 = vsub.f32 %v1052_v33, %v1053_v32 }
 0x8cb   :  { %v1055_v35 = vmax.f32 %v1054_v34, 0.0 }
 0x8cd   :  { %v1057_v36 = vadd.f32 1e-05, %v1055_v35 }
 0x8cf   :  { %1542 = vrsqrt.f32 %v1057_v36 }
 0x8d3   :  { %v1541_v38 = vpop.eup %1540 }
 0x8d4   :  { %v1020_v42 = vmul.f32 %v1541_v38, %v1017_v41 }
 0x8d6   :  { %v1021_v50 = vmul.f32 %v1020_v42, %v986_v43 }
 0x8d8   :  { %v1022_v53 = vadd.f32 %v1021_v50, %v987_v49 }
 0x8d9   :  { %v1543_v47 = vpop.eup %1542 }
 0x8da   :  { %v1059_v48 = vmul.f32 %v1543_v47, %v1056_v45 }
 0x8dc   :  { %v1063_v5 = vmul.f32 %v1061_v46, %v1059_v48 }
 0x8de   :  { %v1067_v23 = vadd.f32 %v1065_v22, %v1063_v5 }
 0x8e0   :  { %v1068_v29 = vsel %vm873_vm0, %v1022_v53, %v1067_v23 }
 0x8e1   :  { %v1071_v51 = vmul.f32 %v1069_v11, %v1068_v29  ;;  %v1090_v54 = vmul.f32 %v1088_v52, %v1068_v29 }
 0x8e3   :  { %v1072_v56 = vsel %vm988_vm3, %v1071_v51, 0.0  ;;  %v1092_v57 = vrot.slane %v1090_v54, 4 }
 0x8e4   :  { %1073 = vadd.xlane.f32.xlu0 %v1072_v56 }
 0x8e5   :  { %v1094_v59 = vsel %vm988_vm3, %v1092_v57, 0.0 }
 0x8e6   :  { %1095 = vadd.xlane.f32.xlu1 %v1094_v59 }
 0x971   :  { %v1074_v60 = vpop.xlane.xlu0 %1073 }
 0x972   :  { %v1075_v61 = vrot.slane %v1074_v60, 4 }
 0x973   :  { %v1096_v62 = vpop.xlane.xlu1 %1095 }
 0x974   :  { %v1076_v63 = vadd.f32 %v1075_v61, %v1074_v60  ;;  %v1097_v0 = vrot.slane %v1096_v62, 4 }
 0x976   :  { %v1077_v1 = vrot.slane %v1076_v63, 2  ;;  %v1098_v4 = vadd.f32 %v1097_v0, %v1096_v62 }
 0x978   :  { %v1099_v6 = vrot.slane %v1098_v4, 2  ;;  %v1078_v7 = vadd.f32 %v1077_v1, %v1076_v63 }
 0x97a   :  { %v1100_v8 = vadd.f32 %v1099_v6, %v1098_v4  ;;  %v1079_v9 = vrot.slane %v1078_v7, 1 }
 0x97c   :  { %v1080_v10 = vadd.f32 %v1079_v9, %v1078_v7  ;;  %v1101_v2 = vrot.slane %v1100_v8, 1 }
 0x97e   :  { %1480 = vpush %v1080_v10  ;;  %v1102_v3 = vadd.f32 %v1101_v2, %v1100_v8 }
 0x980   :  { %1482 = vpush %v1102_v3 }
 0x9af   :  { %s1481_s25 = spop %1480 }
 0x9b0   :  { %v1082_v13 = vstv %s1481_s25 }
 0x9b1   :  { %v1083_v14 = vadd.f32 %v1082_v13, %v1070_v12  ;;  %s1483_s26 = spop %1482 }
 0x9b2   :  { %v1104_v15 = vstv %s1483_s26 }
 0x9b3   :  { %v1105_v16 = vadd.f32 %v1104_v15, %v1070_v12  ;;  %v1085_v39 = vmul.f32 0.01, %v1083_v14  ;;  %vm1084_vm4 = vcmp.ge.f32.partialorder %v1083_v14, 0.0 }
 0x9b5   :  { %v1107_v17 = vmul.f32 0.01, %v1105_v16  ;;  %vm1106_vm1 = vcmp.ge.f32.partialorder %v1105_v16, 0.0  ;;  %v1086_v44 = vsel %vm1084_vm4, %v1083_v14, %v1085_v39 }
 0x9b7   :  { %v1108_v18 = vsel %vm1106_vm1, %v1105_v16, %v1107_v17 }
 0x9b8   :  { %1110 = vrot.lane.b32.xlu0 %v1108_v18, %s1570_s27 }
 0xa2a   :  { %v1111_v40 = vpop.permute.xlu0 %1110 }
 0xa2b   :  { %v1114_v55 = vsel %vm1113_vm5, %v1086_v44, %v1111_v40 }
 0xa2c   :  { %1116 = vst.msk [vmem:[#allocation3] sm:$0x1] %vm1115_vm6, %v1114_v55 }
 0xa2d   :  { %1555 = shalt.err (!%p1552_p4)
}
 0xa2e   :  { %s1556_s5 = scalar_lea.hbm %s2218_s2, 16 }
 0xa2f   :  { %p1557_p5 = scmp.ne.s32.totalorder %s2218_s2, %s1556_s5  ;;  %p1560_p6 = scmp.lt.u32.totalorder %s1556_s5, %s2218_s2 }
 0xa31   :  { %p1562_p7 = pnand %p1560_p6, %p1557_p5 }
 0xa33   :  { %1565 = shalt.err (!%p1562_p7)
}
 0xa34   :  { %1126 = dma.vmem_to_hbm [thread:$0]  %s1124_s30, 16, %s2218_s2, [#allocation4]  }
 0xa35   :  { %1566 = dma.done.wait [#allocation4], 16  }
 0xa36   :  { %1567 = vsyncadd [#allocation4], 4294967280 }
 0xa37   :  { %1130 = vsyncpa [#allocation4], 1 }

</bundles_post_ra>
